<compile_context>
chip_gen: v7x
topology: tpu7x:2x2x1
jax: 0.10.0
libtpu: 0.0.40
codegen_flags: <defaults>
</compile_context>

<pallas_src>
import functools

import jax
import jax.numpy as jnp
from jax.experimental import pallas as pl
from jax.experimental.pallas import tpu as pltpu

# ---- model hyperparameters (small, but shapes consistent with the module) ----
NUM_LAYERS = 3        # dilations 1, 2, 4
NUM_F_MAPS = 32
DIM = 32              # input feature dim
NUM_CLASSES = 8
BATCH = 2
T = 128               # per-example sequence length (lane-aligned)


def _ssm_kernel(x_ref, m_ref,
                w_in_ref, b_in_ref,
                wd_ref, bd_ref,
                w1_ref, b1_ref,
                w_out_ref, b_out_ref,
                o_ref, *, seq_len, num_layers):
    """Full SingleStageModel forward on a (C, block_T) lane-folded tile."""
    bt = x_ref.shape[-1]              # lanes in this block (= examples_in_block * seq_len)
    f = w_in_ref.shape[0]

    m = m_ref[...]                                        # (1, bt) f32

    # per-example local time index, lane axis only (1, bt) — no (F, bt) iota
    local_t = jax.lax.broadcasted_iota(jnp.int32, (1, bt), 1) % seq_len

    # conv_1x1 (pointwise conv == channel matmul); x arrives bf16, accumulate f32
    h = jnp.dot(w_in_ref[...], x_ref[...],
                preferred_element_type=jnp.float32) + b_in_ref[...]     # (F, bt) f32

    for i in range(num_layers):
        d = 2 ** i
        # ONE matmul producing all 3 tap partials stacked along the output dim
        z = jnp.dot(wd_ref[i], h.astype(jnp.bfloat16),
                    preferred_element_type=jnp.float32)                 # (3F, bt) f32

        # zero-padding of the dilated conv as (1, bt) 0/1 row masks applied
        # AFTER the matmul (mask/roll commute with the channel contraction);
        # also guarantees no cross-example leakage through the circular roll.
        prev_ok = (local_t >= d).astype(jnp.float32)                    # (1, bt)
        next_ok = (local_t < seq_len - d).astype(jnp.float32)           # (1, bt)

        y = (prev_ok * pltpu.roll(z[0:f, :], d, axis=1)                 # tap at t-d
             + z[f:2 * f, :]                                            # tap at t
             + next_ok * pltpu.roll(z[2 * f:3 * f, :], bt - d, axis=1)  # tap at t+d
             + bd_ref[i])                                               # (F, bt) f32
        y = jnp.maximum(y, 0.0)                                         # ReLU (f32)

        # conv_1x1 inside the residual layer
        y = jnp.dot(w1_ref[i], y.astype(jnp.bfloat16),
                    preferred_element_type=jnp.float32) + b1_ref[i]
        # TODO(synk): nn.Dropout is identity in eval mode; training-mode dropout omitted.
        h = (h + y) * m                                                 # residual + mask

    out = jnp.dot(w_out_ref[...], h.astype(jnp.bfloat16),
                  preferred_element_type=jnp.float32) + b_out_ref[...]  # (C, bt)
    o_ref[...] = (out * m).astype(o_ref.dtype)


@functools.partial(jax.jit, static_argnames=("num_blocks", "vmem_limit_bytes"))
def single_stage_model(x, mask, params, *, num_blocks=1, vmem_limit_bytes=None):
    """x: (N, DIM, T) float32; mask: (N, num_classes, T) float32."""
    (w_in, b_in, wd, bd, w1, b1, w_out, b_out) = params
    n, dim, t = x.shape
    num_classes = w_out.shape[0]
    f = w_in.shape[0]
    num_layers = wd.shape[0]

    # ---- host-side layout (fused under this jit): fold batch into lanes, cast bf16 ----
    x_f = jnp.transpose(x, (1, 0, 2)).reshape(dim, n * t).astype(jnp.bfloat16)  # (DIM, N*T)
    m_f = mask[:, 0, :].reshape(1, n * t)                                       # (1, N*T)

    # ---- host-side weight prep: stack the 3 taps along the OUTPUT dim -> (L, 3F, F) ----
    wd_s = wd.reshape(num_layers, 3 * f, f).astype(jnp.bfloat16)
    w_in_b = w_in.astype(jnp.bfloat16)
    w1_b = w1.astype(jnp.bfloat16)
    w_out_b = w_out.astype(jnp.bfloat16)

    assert (n * t) % num_blocks == 0
    bt = (n * t) // num_blocks
    assert bt % t == 0, "grid blocks must split on example boundaries"
    assert bt % 128 == 0, "folded lane tile must be a multiple of 128"

    kernel = functools.partial(_ssm_kernel, seq_len=t, num_layers=num_layers)

    def full(a):
        # constant-index, whole-array weight spec; single-buffer it when the
        # grid has >1 step (no point double-buffering a constant-index input).
        nd = a.ndim
        if num_blocks > 1:
            return pl.BlockSpec(a.shape, lambda b, _nd=nd: (0,) * _nd,
                                pipeline_mode=pl.Buffered(1))
        return pl.BlockSpec(a.shape, lambda b, _nd=nd: (0,) * _nd)

    out_f = pl.pallas_call(
        kernel,
        out_shape=jax.ShapeDtypeStruct((num_classes, n * t), jnp.float32),
        grid_spec=pltpu.PrefetchScalarGridSpec(
            num_scalar_prefetch=0,
            grid=(num_blocks,),
            in_specs=[
                pl.BlockSpec((dim, bt), lambda b: (0, b)),      # folded x (bf16)
                pl.BlockSpec((1, bt), lambda b: (0, b)),        # folded mask[:, 0:1, :]
                full(w_in_b), full(b_in),
                full(wd_s), full(bd),
                full(w1_b), full(b1),
                full(w_out_b), full(b_out),
            ],
            out_specs=pl.BlockSpec((num_classes, bt), lambda b: (0, b)),
        ),
        # "parallel" lets v7x shard blocks across its 2 TensorCores when num_blocks>1.
        compiler_params=pltpu.CompilerParams(
            dimension_semantics=("parallel",),
            vmem_limit_bytes=vmem_limit_bytes),
    )(x_f, m_f, w_in_b, b_in, wd_s, bd, w1_b, b1, w_out_b, b_out)

    # unfold back to PyTorch (N, C, T) layout
    return out_f.reshape(num_classes, n, t).transpose(1, 0, 2)


def reference_forward(x, mask, params):
    """Pure-JAX reference (mirrors the PyTorch module, eval mode), using the
    same bf16-operand / f32-accumulate matmuls as the kernel."""
    (w_in, b_in, wd, bd, w1, b1, w_out, b_out) = params
    bf = lambda a: a.astype(jnp.bfloat16)
    t = x.shape[-1]
    m = mask[:, 0:1, :]
    h = jnp.einsum('oi,bit->bot', bf(w_in), bf(x),
                   preferred_element_type=jnp.float32) + b_in[None]
    for i in range(wd.shape[0]):
        d = 2 ** i
        hb = bf(h)
        hp = jnp.pad(hb, ((0, 0), (0, 0), (d, 0)))[:, :, :t]
        hn = jnp.pad(hb, ((0, 0), (0, 0), (0, d)))[:, :, d:]
        y = (jnp.einsum('oi,bit->bot', bf(wd[i, 0]), hp, preferred_element_type=jnp.float32)
             + jnp.einsum('oi,bit->bot', bf(wd[i, 1]), hb, preferred_element_type=jnp.float32)
             + jnp.einsum('oi,bit->bot', bf(wd[i, 2]), hn, preferred_element_type=jnp.float32)
             + bd[i][None])
        y = jax.nn.relu(y)
        y = jnp.einsum('oi,bit->bot', bf(w1[i]), bf(y),
                       preferred_element_type=jnp.float32) + b1[i][None]
        h = (h + y) * m
    out = jnp.einsum('oi,bit->bot', bf(w_out), bf(h),
                     preferred_element_type=jnp.float32) + b_out[None]
    return out * m


def init_params(key):
    ks = jax.random.split(key, 8)
    s = 0.1
    w_in = s * jax.random.normal(ks[0], (NUM_F_MAPS, DIM), jnp.float32)
    b_in = s * jax.random.normal(ks[1], (NUM_F_MAPS, 1), jnp.float32)
    wd = s * jax.random.normal(ks[2], (NUM_LAYERS, 3, NUM_F_MAPS, NUM_F_MAPS), jnp.float32)
    bd = s * jax.random.normal(ks[3], (NUM_LAYERS, NUM_F_MAPS, 1), jnp.float32)
    w1 = s * jax.random.normal(ks[4], (NUM_LAYERS, NUM_F_MAPS, NUM_F_MAPS), jnp.float32)
    b1 = s * jax.random.normal(ks[5], (NUM_LAYERS, NUM_F_MAPS, 1), jnp.float32)
    w_out = s * jax.random.normal(ks[6], (NUM_CLASSES, NUM_F_MAPS), jnp.float32)
    b_out = s * jax.random.normal(ks[7], (NUM_CLASSES, 1), jnp.float32)
    return (w_in, b_in, wd, bd, w1, b1, w_out, b_out)


if __name__ == "__main__":
    key = jax.random.PRNGKey(0)
    k_x, k_p = jax.random.split(key)
    x = jax.random.normal(k_x, (BATCH, DIM, T), jnp.float32)
    # binary mask, shape (N, num_classes, T) like the PyTorch model expects
    tlen = jnp.array([T, T // 2])
    mask = (jnp.arange(T)[None, None, :] < tlen[:, None, None]).astype(jnp.float32)
    mask = jnp.broadcast_to(mask, (BATCH, NUM_CLASSES, T))

    params = init_params(k_p)

    out = single_stage_model(x, mask, params)   # num_blocks=2 only pays on v7x at large N*T
    out = jax.block_until_ready(out)

    ref = reference_forward(x, mask, params)
    assert out.shape == (BATCH, NUM_CLASSES, T)
    assert jnp.allclose(out, ref, rtol=1e-3, atol=1e-3), "mismatch vs reference"

    print("KERNEL_OK")
</pallas_src>

<mosaic_0001>
module attributes {stable_mosaic.version = 11 : i64} {
  func.func @_ssm_kernel(%arg0: i32, %arg1: memref<32x256xbf16, #tpu.memory_space<vmem>>, %arg2: memref<1x256xf32, #tpu.memory_space<vmem>>, %arg3: memref<32x32xbf16, #tpu.memory_space<vmem>>, %arg4: memref<32x1xf32, #tpu.memory_space<vmem>>, %arg5: memref<3x96x32xbf16, #tpu.memory_space<vmem>>, %arg6: memref<3x32x1xf32, #tpu.memory_space<vmem>>, %arg7: memref<3x32x32xbf16, #tpu.memory_space<vmem>>, %arg8: memref<3x32x1xf32, #tpu.memory_space<vmem>>, %arg9: memref<8x32xbf16, #tpu.memory_space<vmem>>, %arg10: memref<8x1xf32, #tpu.memory_space<vmem>>, %arg11: memref<8x256xf32, #tpu.memory_space<vmem>>) attributes {dimension_semantics = [#tpu.dimension_semantics<parallel>], iteration_bounds = array<i64: 1>, scalar_prefetch = 0 : i64, scratch_operands = 0 : i64, tpu.core_type = #tpu.core_type<tc>, window_params = [{transform_indices = @transform_0, window_bounds = array<i64: 32, 256>}, {transform_indices = @transform_1, window_bounds = array<i64: 1, 256>}, {pipeline_mode = #tpu.pipeline_mode<synchronous>, transform_indices = @transform_2, window_bounds = array<i64: 32, 32>}, {pipeline_mode = #tpu.pipeline_mode<synchronous>, transform_indices = @transform_3, window_bounds = array<i64: 32, 1>}, {pipeline_mode = #tpu.pipeline_mode<synchronous>, transform_indices = @transform_4, window_bounds = array<i64: 3, 96, 32>}, {pipeline_mode = #tpu.pipeline_mode<synchronous>, transform_indices = @transform_5, window_bounds = array<i64: 3, 32, 1>}, {pipeline_mode = #tpu.pipeline_mode<synchronous>, transform_indices = @transform_6, window_bounds = array<i64: 3, 32, 32>}, {pipeline_mode = #tpu.pipeline_mode<synchronous>, transform_indices = @transform_7, window_bounds = array<i64: 3, 32, 1>}, {pipeline_mode = #tpu.pipeline_mode<synchronous>, transform_indices = @transform_8, window_bounds = array<i64: 8, 32>}, {pipeline_mode = #tpu.pipeline_mode<synchronous>, transform_indices = @transform_9, window_bounds = array<i64: 8, 1>}, {transform_indices = @transform_10, window_bounds = array<i64: 8, 256>}]} {
    %c0 = arith.constant 0 : index
    %c0_0 = arith.constant 0 : index
    %0 = vector.load %arg2[%c0, %c0_0] : memref<1x256xf32, #tpu.memory_space<vmem>>, vector<1x256xf32>
    %1 = tpu.iota {dimensions = array<i32: 1>} : vector<1x256xi32>
    %c128_i32 = arith.constant 128 : i32
    %c0_i32 = arith.constant 0 : i32
    %2 = arith.cmpi eq, %c128_i32, %c0_i32 : i32
    %c1_i32 = arith.constant 1 : i32
    %3 = arith.select %2, %c1_i32, %c128_i32 : i32
    %4 = vector.broadcast %3 : i32 to vector<1x256xi32>
    %5 = arith.remsi %1, %4 : vector<1x256xi32>
    %c0_i32_1 = arith.constant 0 : i32
    %6 = vector.broadcast %c0_i32_1 : i32 to vector<1x256xi32>
    %7 = arith.cmpi ne, %5, %6 : vector<1x256xi32>
    %c0_i32_2 = arith.constant 0 : i32
    %8 = vector.broadcast %c0_i32_2 : i32 to vector<1x256xi32>
    %9 = arith.cmpi slt, %5, %8 : vector<1x256xi32>
    %c0_i32_3 = arith.constant 0 : i32
    %10 = arith.cmpi slt, %3, %c0_i32_3 : i32
    %11 = vector.broadcast %10 : i1 to vector<1x256xi1>
    %12 = vector.broadcast %11 : vector<1x256xi1> to vector<1x256xi1>
    %13 = arith.xori %9, %12 : vector<1x256xi1>
    %14 = arith.andi %13, %7 : vector<1x256xi1>
    %15 = vector.broadcast %3 : i32 to vector<1x256xi32>
    %16 = arith.addi %5, %15 : vector<1x256xi32>
    %17 = arith.select %14, %16, %5 : vector<1x256xi1>, vector<1x256xi32>
    %c0_4 = arith.constant 0 : index
    %c0_5 = arith.constant 0 : index
    %18 = vector.load %arg3[%c0_4, %c0_5] : memref<32x32xbf16, #tpu.memory_space<vmem>>, vector<32x32xbf16>
    %c0_6 = arith.constant 0 : index
    %c0_7 = arith.constant 0 : index
    %19 = vector.load %arg1[%c0_6, %c0_7] : memref<32x256xbf16, #tpu.memory_space<vmem>>, vector<32x256xbf16>
    %cst = arith.constant dense<0.000000e+00> : vector<32x256xf32>
    %20 = tpu.matmul %18, %19, %cst {dimension_numbers = #tpu.dot_dimension_numbers<[1], [0], [0], [1], [0, 0, 1, 1], [], []>} : vector<32x32xbf16>, vector<32x256xbf16>, vector<32x256xf32> -> vector<32x256xf32>
    %c0_8 = arith.constant 0 : index
    %c0_9 = arith.constant 0 : index
    %21 = vector.load %arg4[%c0_8, %c0_9] : memref<32x1xf32, #tpu.memory_space<vmem>>, vector<32x1xf32>
    %22 = vector.broadcast %21 : vector<32x1xf32> to vector<32x256xf32>
    %23 = arith.addf %20, %22 : vector<32x256xf32>
    %c0_10 = arith.constant 0 : index
    %c0_11 = arith.constant 0 : index
    %c0_12 = arith.constant 0 : index
    %24 = vector.load %arg5[%c0_10, %c0_11, %c0_12] : memref<3x96x32xbf16, #tpu.memory_space<vmem>>, vector<1x96x32xbf16>
    %25 = vector.shape_cast %24 : vector<1x96x32xbf16> to vector<96x32xbf16>
    %26 = arith.truncf %23 : vector<32x256xf32> to vector<32x256xbf16>
    %cst_13 = arith.constant dense<0.000000e+00> : vector<96x256xf32>
    %27 = tpu.matmul %25, %26, %cst_13 {dimension_numbers = #tpu.dot_dimension_numbers<[1], [0], [0], [1], [0, 0, 1, 1], [], []>} : vector<96x32xbf16>, vector<32x256xbf16>, vector<96x256xf32> -> vector<96x256xf32>
    %c1_i32_14 = arith.constant 1 : i32
    %28 = vector.broadcast %c1_i32_14 : i32 to vector<1x256xi32>
    %29 = arith.cmpi sge, %17, %28 : vector<1x256xi32>
    %30 = arith.extui %29 : vector<1x256xi1> to vector<1x256xi32>
    %31 = arith.sitofp %30 : vector<1x256xi32> to vector<1x256xf32>
    %c127_i32 = arith.constant 127 : i32
    %32 = vector.broadcast %c127_i32 : i32 to vector<1x256xi32>
    %33 = arith.cmpi slt, %17, %32 : vector<1x256xi32>
    %34 = arith.extui %33 : vector<1x256xi1> to vector<1x256xi32>
    %35 = arith.sitofp %34 : vector<1x256xi32> to vector<1x256xf32>
    %36 = vector.extract_strided_slice %27 {offsets = [0, 0], sizes = [32, 256], strides = [1, 1]} : vector<96x256xf32> to vector<32x256xf32>
    %c1_i32_15 = arith.constant 1 : i32
    %37 = tpu.dynamic_rotate %36 by %c1_i32_15 dim 1 : vector<32x256xf32>, i32 -> vector<32x256xf32>
    %38 = vector.broadcast %31 : vector<1x256xf32> to vector<32x256xf32>
    %39 = arith.mulf %38, %37 : vector<32x256xf32>
    %40 = vector.extract_strided_slice %27 {offsets = [32, 0], sizes = [32, 256], strides = [1, 1]} : vector<96x256xf32> to vector<32x256xf32>
    %41 = arith.addf %39, %40 : vector<32x256xf32>
    %42 = vector.extract_strided_slice %27 {offsets = [64, 0], sizes = [32, 256], strides = [1, 1]} : vector<96x256xf32> to vector<32x256xf32>
    %c255_i32 = arith.constant 255 : i32
    %43 = tpu.dynamic_rotate %42 by %c255_i32 dim 1 : vector<32x256xf32>, i32 -> vector<32x256xf32>
    %44 = vector.broadcast %35 : vector<1x256xf32> to vector<32x256xf32>
    %45 = arith.mulf %44, %43 : vector<32x256xf32>
    %46 = arith.addf %41, %45 : vector<32x256xf32>
    %c0_16 = arith.constant 0 : index
    %c0_17 = arith.constant 0 : index
    %c0_18 = arith.constant 0 : index
    %47 = vector.load %arg6[%c0_16, %c0_17, %c0_18] : memref<3x32x1xf32, #tpu.memory_space<vmem>>, vector<1x32x1xf32>
    %48 = vector.shape_cast %47 : vector<1x32x1xf32> to vector<32x1xf32>
    %49 = vector.broadcast %48 : vector<32x1xf32> to vector<32x256xf32>
    %50 = arith.addf %46, %49 : vector<32x256xf32>
    %cst_19 = arith.constant 0.000000e+00 : f32
    %51 = vector.broadcast %cst_19 : f32 to vector<32x256xf32>
    %52 = arith.maximumf %50, %51 : vector<32x256xf32>
    %c0_20 = arith.constant 0 : index
    %c0_21 = arith.constant 0 : index
    %c0_22 = arith.constant 0 : index
    %53 = vector.load %arg7[%c0_20, %c0_21, %c0_22] : memref<3x32x32xbf16, #tpu.memory_space<vmem>>, vector<1x32x32xbf16>
    %54 = vector.shape_cast %53 : vector<1x32x32xbf16> to vector<32x32xbf16>
    %55 = arith.truncf %52 : vector<32x256xf32> to vector<32x256xbf16>
    %cst_23 = arith.constant dense<0.000000e+00> : vector<32x256xf32>
    %56 = tpu.matmul %54, %55, %cst_23 {dimension_numbers = #tpu.dot_dimension_numbers<[1], [0], [0], [1], [0, 0, 1, 1], [], []>} : vector<32x32xbf16>, vector<32x256xbf16>, vector<32x256xf32> -> vector<32x256xf32>
    %c0_24 = arith.constant 0 : index
    %c0_25 = arith.constant 0 : index
    %c0_26 = arith.constant 0 : index
    %57 = vector.load %arg8[%c0_24, %c0_25, %c0_26] : memref<3x32x1xf32, #tpu.memory_space<vmem>>, vector<1x32x1xf32>
    %58 = vector.shape_cast %57 : vector<1x32x1xf32> to vector<32x1xf32>
    %59 = vector.broadcast %58 : vector<32x1xf32> to vector<32x256xf32>
    %60 = arith.addf %56, %59 : vector<32x256xf32>
    %61 = arith.addf %23, %60 : vector<32x256xf32>
    %62 = vector.broadcast %0 : vector<1x256xf32> to vector<32x256xf32>
    %63 = arith.mulf %61, %62 : vector<32x256xf32>
    %c1 = arith.constant 1 : index
    %c0_27 = arith.constant 0 : index
    %c0_28 = arith.constant 0 : index
    %64 = vector.load %arg5[%c1, %c0_27, %c0_28] : memref<3x96x32xbf16, #tpu.memory_space<vmem>>, vector<1x96x32xbf16>
    %65 = vector.shape_cast %64 : vector<1x96x32xbf16> to vector<96x32xbf16>
    %66 = arith.truncf %63 : vector<32x256xf32> to vector<32x256xbf16>
    %cst_29 = arith.constant dense<0.000000e+00> : vector<96x256xf32>
    %67 = tpu.matmul %65, %66, %cst_29 {dimension_numbers = #tpu.dot_dimension_numbers<[1], [0], [0], [1], [0, 0, 1, 1], [], []>} : vector<96x32xbf16>, vector<32x256xbf16>, vector<96x256xf32> -> vector<96x256xf32>
    %c2_i32 = arith.constant 2 : i32
    %68 = vector.broadcast %c2_i32 : i32 to vector<1x256xi32>
    %69 = arith.cmpi sge, %17, %68 : vector<1x256xi32>
    %70 = arith.extui %69 : vector<1x256xi1> to vector<1x256xi32>
    %71 = arith.sitofp %70 : vector<1x256xi32> to vector<1x256xf32>
    %c126_i32 = arith.constant 126 : i32
    %72 = vector.broadcast %c126_i32 : i32 to vector<1x256xi32>
    %73 = arith.cmpi slt, %17, %72 : vector<1x256xi32>
    %74 = arith.extui %73 : vector<1x256xi1> to vector<1x256xi32>
    %75 = arith.sitofp %74 : vector<1x256xi32> to vector<1x256xf32>
    %76 = vector.extract_strided_slice %67 {offsets = [0, 0], sizes = [32, 256], strides = [1, 1]} : vector<96x256xf32> to vector<32x256xf32>
    %c2_i32_30 = arith.constant 2 : i32
    %77 = tpu.dynamic_rotate %76 by %c2_i32_30 dim 1 : vector<32x256xf32>, i32 -> vector<32x256xf32>
    %78 = vector.broadcast %71 : vector<1x256xf32> to vector<32x256xf32>
    %79 = arith.mulf %78, %77 : vector<32x256xf32>
    %80 = vector.extract_strided_slice %67 {offsets = [32, 0], sizes = [32, 256], strides = [1, 1]} : vector<96x256xf32> to vector<32x256xf32>
    %81 = arith.addf %79, %80 : vector<32x256xf32>
    %82 = vector.extract_strided_slice %67 {offsets = [64, 0], sizes = [32, 256], strides = [1, 1]} : vector<96x256xf32> to vector<32x256xf32>
    %c254_i32 = arith.constant 254 : i32
    %83 = tpu.dynamic_rotate %82 by %c254_i32 dim 1 : vector<32x256xf32>, i32 -> vector<32x256xf32>
    %84 = vector.broadcast %75 : vector<1x256xf32> to vector<32x256xf32>
    %85 = arith.mulf %84, %83 : vector<32x256xf32>
    %86 = arith.addf %81, %85 : vector<32x256xf32>
    %c1_31 = arith.constant 1 : index
    %c0_32 = arith.constant 0 : index
    %c0_33 = arith.constant 0 : index
    %87 = vector.load %arg6[%c1_31, %c0_32, %c0_33] : memref<3x32x1xf32, #tpu.memory_space<vmem>>, vector<1x32x1xf32>
    %88 = vector.shape_cast %87 : vector<1x32x1xf32> to vector<32x1xf32>
    %89 = vector.broadcast %88 : vector<32x1xf32> to vector<32x256xf32>
    %90 = arith.addf %86, %89 : vector<32x256xf32>
    %cst_34 = arith.constant 0.000000e+00 : f32
    %91 = vector.broadcast %cst_34 : f32 to vector<32x256xf32>
    %92 = arith.maximumf %90, %91 : vector<32x256xf32>
    %c1_35 = arith.constant 1 : index
    %c0_36 = arith.constant 0 : index
    %c0_37 = arith.constant 0 : index
    %93 = vector.load %arg7[%c1_35, %c0_36, %c0_37] : memref<3x32x32xbf16, #tpu.memory_space<vmem>>, vector<1x32x32xbf16>
    %94 = vector.shape_cast %93 : vector<1x32x32xbf16> to vector<32x32xbf16>
    %95 = arith.truncf %92 : vector<32x256xf32> to vector<32x256xbf16>
    %cst_38 = arith.constant dense<0.000000e+00> : vector<32x256xf32>
    %96 = tpu.matmul %94, %95, %cst_38 {dimension_numbers = #tpu.dot_dimension_numbers<[1], [0], [0], [1], [0, 0, 1, 1], [], []>} : vector<32x32xbf16>, vector<32x256xbf16>, vector<32x256xf32> -> vector<32x256xf32>
    %c1_39 = arith.constant 1 : index
    %c0_40 = arith.constant 0 : index
    %c0_41 = arith.constant 0 : index
    %97 = vector.load %arg8[%c1_39, %c0_40, %c0_41] : memref<3x32x1xf32, #tpu.memory_space<vmem>>, vector<1x32x1xf32>
    %98 = vector.shape_cast %97 : vector<1x32x1xf32> to vector<32x1xf32>
    %99 = vector.broadcast %98 : vector<32x1xf32> to vector<32x256xf32>
    %100 = arith.addf %96, %99 : vector<32x256xf32>
    %101 = arith.addf %63, %100 : vector<32x256xf32>
    %102 = vector.broadcast %0 : vector<1x256xf32> to vector<32x256xf32>
    %103 = arith.mulf %101, %102 : vector<32x256xf32>
    %c2 = arith.constant 2 : index
    %c0_42 = arith.constant 0 : index
    %c0_43 = arith.constant 0 : index
    %104 = vector.load %arg5[%c2, %c0_42, %c0_43] : memref<3x96x32xbf16, #tpu.memory_space<vmem>>, vector<1x96x32xbf16>
    %105 = vector.shape_cast %104 : vector<1x96x32xbf16> to vector<96x32xbf16>
    %106 = arith.truncf %103 : vector<32x256xf32> to vector<32x256xbf16>
    %cst_44 = arith.constant dense<0.000000e+00> : vector<96x256xf32>
    %107 = tpu.matmul %105, %106, %cst_44 {dimension_numbers = #tpu.dot_dimension_numbers<[1], [0], [0], [1], [0, 0, 1, 1], [], []>} : vector<96x32xbf16>, vector<32x256xbf16>, vector<96x256xf32> -> vector<96x256xf32>
    %c4_i32 = arith.constant 4 : i32
    %108 = vector.broadcast %c4_i32 : i32 to vector<1x256xi32>
    %109 = arith.cmpi sge, %17, %108 : vector<1x256xi32>
    %110 = arith.extui %109 : vector<1x256xi1> to vector<1x256xi32>
    %111 = arith.sitofp %110 : vector<1x256xi32> to vector<1x256xf32>
    %c124_i32 = arith.constant 124 : i32
    %112 = vector.broadcast %c124_i32 : i32 to vector<1x256xi32>
    %113 = arith.cmpi slt, %17, %112 : vector<1x256xi32>
    %114 = arith.extui %113 : vector<1x256xi1> to vector<1x256xi32>
    %115 = arith.sitofp %114 : vector<1x256xi32> to vector<1x256xf32>
    %116 = vector.extract_strided_slice %107 {offsets = [0, 0], sizes = [32, 256], strides = [1, 1]} : vector<96x256xf32> to vector<32x256xf32>
    %c4_i32_45 = arith.constant 4 : i32
    %117 = tpu.dynamic_rotate %116 by %c4_i32_45 dim 1 : vector<32x256xf32>, i32 -> vector<32x256xf32>
    %118 = vector.broadcast %111 : vector<1x256xf32> to vector<32x256xf32>
    %119 = arith.mulf %118, %117 : vector<32x256xf32>
    %120 = vector.extract_strided_slice %107 {offsets = [32, 0], sizes = [32, 256], strides = [1, 1]} : vector<96x256xf32> to vector<32x256xf32>
    %121 = arith.addf %119, %120 : vector<32x256xf32>
    %122 = vector.extract_strided_slice %107 {offsets = [64, 0], sizes = [32, 256], strides = [1, 1]} : vector<96x256xf32> to vector<32x256xf32>
    %c252_i32 = arith.constant 252 : i32
    %123 = tpu.dynamic_rotate %122 by %c252_i32 dim 1 : vector<32x256xf32>, i32 -> vector<32x256xf32>
    %124 = vector.broadcast %115 : vector<1x256xf32> to vector<32x256xf32>
    %125 = arith.mulf %124, %123 : vector<32x256xf32>
    %126 = arith.addf %121, %125 : vector<32x256xf32>
    %c2_46 = arith.constant 2 : index
    %c0_47 = arith.constant 0 : index
    %c0_48 = arith.constant 0 : index
    %127 = vector.load %arg6[%c2_46, %c0_47, %c0_48] : memref<3x32x1xf32, #tpu.memory_space<vmem>>, vector<1x32x1xf32>
    %128 = vector.shape_cast %127 : vector<1x32x1xf32> to vector<32x1xf32>
    %129 = vector.broadcast %128 : vector<32x1xf32> to vector<32x256xf32>
    %130 = arith.addf %126, %129 : vector<32x256xf32>
    %cst_49 = arith.constant 0.000000e+00 : f32
    %131 = vector.broadcast %cst_49 : f32 to vector<32x256xf32>
    %132 = arith.maximumf %130, %131 : vector<32x256xf32>
    %c2_50 = arith.constant 2 : index
    %c0_51 = arith.constant 0 : index
    %c0_52 = arith.constant 0 : index
    %133 = vector.load %arg7[%c2_50, %c0_51, %c0_52] : memref<3x32x32xbf16, #tpu.memory_space<vmem>>, vector<1x32x32xbf16>
    %134 = vector.shape_cast %133 : vector<1x32x32xbf16> to vector<32x32xbf16>
    %135 = arith.truncf %132 : vector<32x256xf32> to vector<32x256xbf16>
    %cst_53 = arith.constant dense<0.000000e+00> : vector<32x256xf32>
    %136 = tpu.matmul %134, %135, %cst_53 {dimension_numbers = #tpu.dot_dimension_numbers<[1], [0], [0], [1], [0, 0, 1, 1], [], []>} : vector<32x32xbf16>, vector<32x256xbf16>, vector<32x256xf32> -> vector<32x256xf32>
    %c2_54 = arith.constant 2 : index
    %c0_55 = arith.constant 0 : index
    %c0_56 = arith.constant 0 : index
    %137 = vector.load %arg8[%c2_54, %c0_55, %c0_56] : memref<3x32x1xf32, #tpu.memory_space<vmem>>, vector<1x32x1xf32>
    %138 = vector.shape_cast %137 : vector<1x32x1xf32> to vector<32x1xf32>
    %139 = vector.broadcast %138 : vector<32x1xf32> to vector<32x256xf32>
    %140 = arith.addf %136, %139 : vector<32x256xf32>
    %141 = arith.addf %103, %140 : vector<32x256xf32>
    %142 = vector.broadcast %0 : vector<1x256xf32> to vector<32x256xf32>
    %143 = arith.mulf %141, %142 : vector<32x256xf32>
    %c0_57 = arith.constant 0 : index
    %c0_58 = arith.constant 0 : index
    %144 = vector.load %arg9[%c0_57, %c0_58] : memref<8x32xbf16, #tpu.memory_space<vmem>>, vector<8x32xbf16>
    %145 = arith.truncf %143 : vector<32x256xf32> to vector<32x256xbf16>
    %cst_59 = arith.constant dense<0.000000e+00> : vector<8x256xf32>
    %146 = tpu.matmul %144, %145, %cst_59 {dimension_numbers = #tpu.dot_dimension_numbers<[1], [0], [0], [1], [0, 0, 1, 1], [], []>} : vector<8x32xbf16>, vector<32x256xbf16>, vector<8x256xf32> -> vector<8x256xf32>
    %c0_60 = arith.constant 0 : index
    %c0_61 = arith.constant 0 : index
    %147 = vector.load %arg10[%c0_60, %c0_61] : memref<8x1xf32, #tpu.memory_space<vmem>>, vector<8x1xf32>
    %148 = vector.broadcast %147 : vector<8x1xf32> to vector<8x256xf32>
    %149 = arith.addf %146, %148 : vector<8x256xf32>
    %150 = vector.broadcast %0 : vector<1x256xf32> to vector<8x256xf32>
    %151 = arith.mulf %149, %150 : vector<8x256xf32>
    %c0_62 = arith.constant 0 : index
    %c0_63 = arith.constant 0 : index
    %152 = vector.load %arg11[%c0_62, %c0_63] : memref<8x256xf32, #tpu.memory_space<vmem>>, vector<8x256xf32>
    tpu.vector_store %arg11[%c0_62, %c0_63], %151 {strides = array<i32>} : memref<8x256xf32, #tpu.memory_space<vmem>>, vector<8x256xf32>,
    return
  }
  func.func @transform_0(%arg0: i32) -> (i32, i32) {
    %c0_i32 = arith.constant 0 : i32
    %c0_i32_0 = arith.constant 0 : i32
    return %c0_i32, %arg0 : i32, i32
  }
  func.func @transform_1(%arg0: i32) -> (i32, i32) {
    %c0_i32 = arith.constant 0 : i32
    %c0_i32_0 = arith.constant 0 : i32
    return %c0_i32, %arg0 : i32, i32
  }
  func.func @transform_2(%arg0: i32) -> (i32, i32) {
    %c0_i32 = arith.constant 0 : i32
    %c0_i32_0 = arith.constant 0 : i32
    %c0_i32_1 = arith.constant 0 : i32
    return %c0_i32, %c0_i32_0 : i32, i32
  }
  func.func @transform_3(%arg0: i32) -> (i32, i32) {
    %c0_i32 = arith.constant 0 : i32
    %c0_i32_0 = arith.constant 0 : i32
    %c0_i32_1 = arith.constant 0 : i32
    return %c0_i32, %c0_i32_0 : i32, i32
  }
  func.func @transform_4(%arg0: i32) -> (i32, i32, i32) {
    %c0_i32 = arith.constant 0 : i32
    %c0_i32_0 = arith.constant 0 : i32
    %c0_i32_1 = arith.constant 0 : i32
    %c0_i32_2 = arith.constant 0 : i32
    return %c0_i32, %c0_i32_0, %c0_i32_1 : i32, i32, i32
  }
  func.func @transform_5(%arg0: i32) -> (i32, i32, i32) {
    %c0_i32 = arith.constant 0 : i32
    %c0_i32_0 = arith.constant 0 : i32
    %c0_i32_1 = arith.constant 0 : i32
    %c0_i32_2 = arith.constant 0 : i32
    return %c0_i32, %c0_i32_0, %c0_i32_1 : i32, i32, i32
  }
  func.func @transform_6(%arg0: i32) -> (i32, i32, i32) {
    %c0_i32 = arith.constant 0 : i32
    %c0_i32_0 = arith.constant 0 : i32
    %c0_i32_1 = arith.constant 0 : i32
    %c0_i32_2 = arith.constant 0 : i32
    return %c0_i32, %c0_i32_0, %c0_i32_1 : i32, i32, i32
  }
  func.func @transform_7(%arg0: i32) -> (i32, i32, i32) {
    %c0_i32 = arith.constant 0 : i32
    %c0_i32_0 = arith.constant 0 : i32
    %c0_i32_1 = arith.constant 0 : i32
    %c0_i32_2 = arith.constant 0 : i32
    return %c0_i32, %c0_i32_0, %c0_i32_1 : i32, i32, i32
  }
  func.func @transform_8(%arg0: i32) -> (i32, i32) {
    %c0_i32 = arith.constant 0 : i32
    %c0_i32_0 = arith.constant 0 : i32
    %c0_i32_1 = arith.constant 0 : i32
    return %c0_i32, %c0_i32_0 : i32, i32
  }
  func.func @transform_9(%arg0: i32) -> (i32, i32) {
    %c0_i32 = arith.constant 0 : i32
    %c0_i32_0 = arith.constant 0 : i32
    %c0_i32_1 = arith.constant 0 : i32
    return %c0_i32, %c0_i32_0 : i32, i32
  }
  func.func @transform_10(%arg0: i32) -> (i32, i32) {
    %c0_i32 = arith.constant 0 : i32
    %c0_i32_0 = arith.constant 0 : i32
    return %c0_i32, %arg0 : i32, i32
  }
}

</mosaic_0001>

<bundles_post_ra>
// kernel: single_stage_model.1
= control target key start
LH: loop header
LB: loop body
LE: loop exit
PB: predicated region body
PF: predicated region fallthrough
CT: control target
= control target key end

     0   :  { %v1687_v2 = vmov 0   ;;  %vm127_vm0 = vcmask 261120   ;;  %s2376_s0 = inlined_call_operand.vmem [shape: bf16[32,256], index: 0, kind: input, shape index: {}]   ;;  %s2377_s1 = inlined_call_operand.vmem [shape: f32[1,256], index: 1, kind: input, shape index: {}]   ;;  %s2378_s2 = inlined_call_operand.vmem [shape: bf16[32,32], index: 2, kind: input, shape index: {}]   ;;  %s2379_s3 = inlined_call_operand.vmem [shape: f32[32,1], index: 3, kind: input, shape index: {}]   ;;  %s2380_s4 = inlined_call_operand.vmem [shape: bf16[3,96,32], index: 4, kind: input, shape index: {}]   ;;  %s2381_s5 = inlined_call_operand.vmem [shape: f32[3,32,1], index: 5, kind: input, shape index: {}]   ;;  %s2382_s6 = inlined_call_operand.vmem [shape: bf16[3,32,32], index: 6, kind: input, shape index: {}]   ;;  %s2383_s7 = inlined_call_operand.vmem [shape: f32[3,32,1], index: 7, kind: input, shape index: {}]   ;;  %s2384_s8 = inlined_call_operand.vmem [shape: bf16[8,32], index: 8, kind: input, shape index: {}]   ;;  %s2385_s9 = inlined_call_operand.vmem [shape: f32[8,1], index: 9, kind: input, shape index: {}]   ;;  %s2386_s10 = inlined_call_operand.hbm [shape: f32[8,256], index: 10, kind: output, shape index: {}]  }
   0x1   :  { %v1631_v0 = vld [vmem:[%s2376_s0 + $0x4] ss:$8 sps:$4 sm:$0xff]   ;;  %v1633_v1 = vld [vmem:[%s2376_s0] ss:$8 sps:$4 sm:$0xff]   ;;  %166 = vmatprep.mubr.bf16.mxu0 %v1687_v2  ;;  %1629 = vset.pattern.permute.xlu0 %v1687_v2  ;;  %v1634_v3 = vld [vmem:[%s2376_s0 + $0x14] ss:$8 sps:$4 sm:$0xff]  }
   0x2   :  { %134 = vmatprep.subr.bf16.mxu0 %v1631_v0  ;;  %1630 = vset.pattern.permute.xlu1 %v1687_v2  ;;  %v1636_v4 = vld [vmem:[%s2376_s0 + $0x10] ss:$8 sps:$4 sm:$0xff]   ;;  %v73_v5 = vld [vmem:[%s2379_s3] sm:$0xff]  ;;  %v74_v8 = vld [vmem:[%s2379_s3 + $0x8] sm:$0xff] }
   0x3   :  { %135 = vmatpush1.bf16.msra.mxu0 %v1633_v1  ;;  %283 = vmatprep.mubr.bf16.mxu1 %v1687_v2  ;;  %v75_v6 = vld [vmem:[%s2379_s3 + $0x10] sm:$0xff]  ;;  %v1637_v7 = vld [vmem:[%s2378_s2] sm:$0xff]   ;;  %v76_v9 = vld [vmem:[%s2379_s3 + $0x18] sm:$0xff] }
   0x4   :  { %136 = vmatprep.subr.bf16.mxu0 %v1634_v3  ;;  %79 = vperm.xlu0 %1629, %v73_v5   ;;  %v438_v10 = vld [vmem:[%s2381_s5] sm:$0xff]  ;;  %v439_v11 = vld [vmem:[%s2381_s5 + $0x8] sm:$0xff]  ;;  %v440_v13 = vld [vmem:[%s2381_s5 + $0x10] sm:$0xff] }
   0x5   :  { %89 = vperm.xlu1 %1630, %v75_v6   ;;  %v1638_v12 = vld [vmem:[%s2378_s2 + $0x8] sm:$0xff]   ;;  %v441_v14 = vld [vmem:[%s2381_s5 + $0x18] sm:$0xff] }
   0x7   :  { %137 = vmatpush1.bf16.msra.mxu0 %v1636_v4 }
   0x8   :  { %84 = vperm.xlu0 %1629, %v74_v8  }
   0x9   :  { %94 = vperm.xlu1 %1630, %v76_v9  }
   0xa   :  { %1509 = vmatmul.mubr.msk.bf16.vlgmr.msra.gmra.mrb[0].mxu0 %vm127_vm0, %v1637_v7 }
   0xb   :  { %176 = vmatprep.mubr.bf16.mxu0 %v1687_v2 }
   0xc   :  { %444 = vperm.xlu0 %1629, %v438_v10  }
   0xd   :  { %449 = vperm.xlu1 %1630, %v439_v11  }
  0x10   :  { %454 = vperm.xlu0 %1629, %v440_v13  }
  0x11   :  { %459 = vperm.xlu1 %1630, %v441_v14  }
  0x12   :  { %1510 = vmatmul.mubr.msk.bf16.gmra.mrb[4].mxu0 %vm127_vm0, %v1638_v12 }
  0x13   :  { %558 = vmatprep.mubr.bf16.mxu0 %v1687_v2 }
  0x14   :  { %15 = vsyncpa [#allocation3], 0  ;;  %v1639_v39 = vld [vmem:[%s2380_s4] sm:$0xff]   ;;  %v1640_v40 = vld [vmem:[%s2380_s4 + $0x8] sm:$0xff]   ;;  %s1688_s29 = smov 1   ;;  %s1689_s30 = smov 127  }
  0x15   :  { %v1641_v41 = vld [vmem:[%s2380_s4 + $0x10] sm:$0xff]   ;;  %v1642_v42 = vld [vmem:[%s2380_s4 + $0x18] sm:$0xff]   ;;  %v1643_v43 = vld [vmem:[%s2380_s4 + $0x20] sm:$0xff]   ;;  %s1691_s19 = smov 2   ;;  %s1692_s20 = smov 126  }
  0x16   :  { %v1644_v44 = vld [vmem:[%s2380_s4 + $0x28] sm:$0xff]   ;;  %v486_v6 = vld [vmem:[%s2383_s7] sm:$0xff]  ;;  %v488_v8 = vld [vmem:[%s2383_s7 + $0x10] sm:$0xff]  ;;  %s1693_s28 = smov 4   ;;  %s1695_s18 = smov [#allocation2]  }
  0x17   :  { %v487_v7 = vld [vmem:[%s2383_s7 + $0x8] sm:$0xff]  ;;  %v489_v9 = vld [vmem:[%s2383_s7 + $0x18] sm:$0xff]  ;;  %v1559_v10 = vld [vmem:[%s2381_s5 + $0x20] sm:$0xff]  ;;  %s1495_s2 = sshll.u32 %s1695_s18, 4  ;;  %s1496_s2 = int_to_ptr.vmem [resolvable:$true] %s1495_s2 }
  0x18   :  { %v1560_v11 = vld [vmem:[%s2381_s5 + $0x28] sm:$0xff]  ;;  %v1561_v12 = vld [vmem:[%s2381_s5 + $0x30] sm:$0xff]  ;;  %v1562_v13 = vld [vmem:[%s2381_s5 + $0x38] sm:$0xff]  ;;  %p1668_p1 = scmp.lt.s32.totalorder %s1496_s2, %s1496_s2 }
  0x83   :  { %v80_v15 = vpop.permute.xlu0 %79 }
  0x84   :  { %v90_v22 = vpop.permute.xlu1 %89 }
  0x87   :  { %v85_v18 = vpop.permute.xlu0 %84 }
  0x88   :  { %v95_v30 = vpop.permute.xlu1 %94 }
  0x8b   :  { %v1895_v14 = vpop.permute.xlu0 %444 }
  0xdd   :  { %v168_v16 = vpop.f32.mrb[0].mxu0 }
  0xde   :  { %v170_v17 = vpop.f32.mrb[1].mxu0  ;;  %v1807_v25 = vadd.f32 %v168_v16, %v80_v15  ;;  %v1899_v16 = vpop.permute.xlu0 %454 }
  0xdf   :  { %v172_v19 = vpop.f32.mrb[2].mxu0  ;;  %v1803_v23 = vadd.f32 %v170_v17, %v80_v15  ;;  %v1897_v15 = vpop.permute.xlu1 %449 }
  0xe0   :  { %v1801_v20 = vadd.f32 %v172_v19, %v85_v18  ;;  %v174_v21 = vpop.f32.mrb[3].mxu0  ;;  %v38_v19 = vlaneseq }
  0xe1   :  { %v1805_v24 = vadd.f32 %v174_v21, %v85_v18 }
  0xe2   :  { %v199_v27 = vpack.c.bf16 %v1801_v20, %v1807_v25 }
  0xe3   :  { %v200_v26 = vpack.c.bf16 %v1805_v24, %v1803_v23  ;;  %v1901_v17 = vpop.permute.xlu1 %459 }
  0xe5   :  { %v178_v28 = vpop.f32.mrb[4].mxu0  ;;  %251 = vmatprep.subr.bf16.mxu1 %v200_v26 }
  0xe6   :  { %v180_v29 = vpop.f32.mrb[5].mxu0  ;;  %252 = vmatpush1.bf16.msra.mxu1 %v199_v27  ;;  %v1819_v36 = vadd.f32 %v178_v28, %v90_v22 }
  0xe7   :  { %v182_v31 = vpop.f32.mrb[6].mxu0  ;;  %v1815_v34 = vadd.f32 %v180_v29, %v90_v22  ;;  %v1904_v22 = vand.u32 127, %v38_v19 }
  0xe8   :  { %v1813_v32 = vadd.f32 %v182_v31, %v95_v30  ;;  %v184_v33 = vpop.f32.mrb[7].mxu0 }
  0xe9   :  { %v1817_v35 = vadd.f32 %v184_v33, %v95_v30  ;;  %v40_v27 = vadd.s32 128, %v1904_v22  ;;  %vm344_vm1 = vcmp.ge.s32.totalorder %v1904_v22, 1  ;;  %vm372_vm3 = vcmp.lt.s32.totalorder %v1904_v22, 1 }
  0xea   :  { %v201_v38 = vpack.c.bf16 %v1813_v32, %v1819_v36  ;;  %vm350_vm4 = vcmp.lt.s32.totalorder %v1904_v22, 127  ;;  %vm764_vm6 = vcmp.ge.s32.totalorder %v1904_v22, 2  ;;  %vm792_vm8 = vcmp.lt.s32.totalorder %v1904_v22, 2 }
  0xeb   :  { %v202_v37 = vpack.c.bf16 %v1817_v35, %v1815_v34  ;;  %v1907_v29 = vand.u32 127, %v40_v27  ;;  %vm770_vm9 = vcmp.lt.s32.totalorder %v1904_v22, 126  ;;  %vm1176_vm11 = vcmp.ge.s32.totalorder %v1904_v22, 4 }
  0xec   :  { %vm1204_vm13 = vcmp.lt.s32.totalorder %v1904_v22, 4  ;;  %vm1182_vm14 = vcmp.lt.s32.totalorder %v1904_v22, 124 }
  0xed   :  { %253 = vmatprep.subr.bf16.mxu1 %v202_v37  ;;  %vm345_vm2 = vcmp.ge.s32.totalorder %v1907_v29, 1  ;;  %v1690_v37 = vmov 0.0   ;;  %vm351_vm5 = vcmp.lt.s32.totalorder %v1907_v29, 127  ;;  %vm765_vm7 = vcmp.ge.s32.totalorder %v1907_v29, 2 }
  0xee   :  { %254 = vmatpush1.bf16.msra.mxu1 %v201_v38  ;;  %v1523_v38 = vsel %vm344_vm1, 1.0, %v1690_v37  ;;  %vm771_vm10 = vcmp.lt.s32.totalorder %v1907_v29, 126  ;;  %vm1177_vm12 = vcmp.ge.s32.totalorder %v1907_v29, 4  ;;  %vm1183_vm15 = vcmp.lt.s32.totalorder %v1907_v29, 124 }
  0xf1   :  { %1517 = vmatmul.mubr.msk.bf16.vlgmr.msra.gmra.mrb[0].mxu1 %vm127_vm0, %v1639_v39  ;;  %v1524_v39 = vsel %vm345_vm2, 1.0, %v1690_v37 }
  0xf2   :  { %293 = vmatprep.mubr.bf16.mxu1 %v1687_v2 }
  0xf9   :  { %1518 = vmatmul.mubr.msk.bf16.gmra.mrb[4].mxu1 %vm127_vm0, %v1640_v40 }
  0xfa   :  { %303 = vmatprep.mubr.bf16.mxu1 %v1687_v2 }
 0x101   :  { %1519 = vmatmul.mubr.msk.bf16.gmra.mrb[8].mxu1 %vm127_vm0, %v1641_v41 }
 0x102   :  { %313 = vmatprep.mubr.bf16.mxu1 %v1687_v2 }
 0x109   :  { %1520 = vmatmul.mubr.msk.bf16.gmra.mrb[12].mxu1 %vm127_vm0, %v1642_v42 }
 0x10a   :  { %323 = vmatprep.mubr.bf16.mxu1 %v1687_v2 }
 0x111   :  { %1521 = vmatmul.mubr.msk.bf16.gmra.mrb[16].mxu1 %vm127_vm0, %v1643_v43 }
 0x112   :  { %333 = vmatprep.mubr.bf16.mxu1 %v1687_v2 }
 0x119   :  { %1522 = vmatmul.mubr.msk.bf16.gmra.mrb[20].mxu1 %vm127_vm0, %v1644_v44 }
 0x11a   :  { %981 = vmatprep.mubr.bf16.mxu1 %v1687_v2 }
 0x1c4   :  { %v285_v45 = vpop.f32.mrb[0].mxu1 }
 0x1c5   :  { %356 = vrot.lane.b32.xlu0 %v285_v45, %s1688_s29  ;;  %v287_v46 = vpop.f32.mrb[1].mxu1 }
 0x1c6   :  { %v289_v47 = vpop.f32.mrb[2].mxu1 }
 0x1c7   :  { %358 = vrot.lane.b32.xlu1 %v289_v47, %s1688_s29  ;;  %v291_v48 = vpop.f32.mrb[3].mxu1 }
 0x1c9   :  { %364 = vrot.lane.b32.xlu0 %v287_v46, %s1688_s29 }
 0x1cb   :  { %366 = vrot.lane.b32.xlu1 %v291_v48, %s1688_s29 }
 0x1cc   :  { %v295_v49 = vpop.f32.mrb[4].mxu1 }
 0x1cd   :  { %360 = vrot.lane.b32.xlu0 %v295_v49, %s1688_s29  ;;  %v297_v50 = vpop.f32.mrb[5].mxu1 }
 0x1ce   :  { %v299_v51 = vpop.f32.mrb[6].mxu1 }
 0x1cf   :  { %362 = vrot.lane.b32.xlu1 %v299_v51, %s1688_s29  ;;  %v301_v52 = vpop.f32.mrb[7].mxu1  ;;  %v1525_v51 = vsel %vm350_vm4, 1.0, %v1690_v37 }
 0x1d1   :  { %368 = vrot.lane.b32.xlu0 %v297_v50, %s1688_s29 }
 0x1d3   :  { %370 = vrot.lane.b32.xlu1 %v301_v52, %s1688_s29  ;;  %v1526_v52 = vsel %vm351_vm5, 1.0, %v1690_v37 }
 0x1d4   :  { %v1855_v53 = vpop.f32.mrb[8].mxu1 }
 0x1d5   :  { %v1857_v54 = vpop.f32.mrb[9].mxu1 }
 0x1d6   :  { %v1859_v55 = vpop.f32.mrb[10].mxu1 }
 0x1d7   :  { %v1861_v56 = vpop.f32.mrb[11].mxu1 }
 0x1dc   :  { %v1863_v57 = vpop.f32.mrb[12].mxu1 }
 0x1dd   :  { %v1865_v58 = vpop.f32.mrb[13].mxu1 }
 0x1de   :  { %v1867_v59 = vpop.f32.mrb[14].mxu1 }
 0x1df   :  { %v1869_v60 = vpop.f32.mrb[15].mxu1 }
 0x1e4   :  { %v325_v61 = vpop.f32.mrb[16].mxu1 }
 0x1e5   :  { %397 = vrot.lane.b32.xlu0 %v325_v61, %s1689_s30  ;;  %v327_v62 = vpop.f32.mrb[17].mxu1 }
 0x1e6   :  { %v329_v63 = vpop.f32.mrb[18].mxu1 }
 0x1e7   :  { %399 = vrot.lane.b32.xlu1 %v329_v63, %s1689_s30  ;;  %v331_v0 = vpop.f32.mrb[19].mxu1 }
 0x1e9   :  { %405 = vrot.lane.b32.xlu0 %v327_v62, %s1689_s30 }
 0x1eb   :  { %407 = vrot.lane.b32.xlu1 %v331_v0, %s1689_s30 }
 0x1ec   :  { %v335_v1 = vpop.f32.mrb[20].mxu1 }
 0x1ed   :  { %401 = vrot.lane.b32.xlu0 %v335_v1, %s1689_s30  ;;  %v337_v3 = vpop.f32.mrb[21].mxu1 }
 0x1ee   :  { %v339_v4 = vpop.f32.mrb[22].mxu1 }
 0x1ef   :  { %403 = vrot.lane.b32.xlu1 %v339_v4, %s1689_s30  ;;  %v341_v5 = vpop.f32.mrb[23].mxu1 }
 0x1f1   :  { %409 = vrot.lane.b32.xlu0 %v337_v3, %s1689_s30 }
 0x1f3   :  { %411 = vrot.lane.b32.xlu1 %v341_v5, %s1689_s30 }
 0x1f5   :  { %492 = vperm.xlu0 %1629, %v486_v6  }
 0x1f7   :  { %497 = vperm.xlu1 %1630, %v487_v7  }
 0x1f9   :  { %502 = vperm.xlu0 %1629, %v488_v8  }
 0x1fb   :  { %507 = vperm.xlu1 %1630, %v489_v9  }
 0x1fd   :  { %865 = vperm.xlu0 %1629, %v1559_v10  }
 0x1ff   :  { %870 = vperm.xlu1 %1630, %v1560_v11  }
 0x201   :  { %875 = vperm.xlu0 %1629, %v1561_v12  }
 0x203   :  { %880 = vperm.xlu1 %1630, %v1562_v13  }
 0x237   :  { %v357_v18 = vpop.permute.xlu0 %356 }
 0x239   :  { %v359_v21 = vpop.permute.xlu1 %358 }
 0x23b   :  { %v365_v26 = vpop.permute.xlu0 %364 }
 0x23c   :  { %v373_v40 = vsel %vm372_vm3, %v357_v18, %v365_v26  ;;  %v377_v41 = vsel %vm372_vm3, %v365_v26, %v357_v18 }
 0x23d   :  { %v367_v28 = vpop.permute.xlu1 %366  ;;  %v381_v45 = vmul.f32 %v1523_v38, %v377_v41  ;;  %v382_v46 = vmul.f32 %v1524_v39, %v373_v40 }
 0x23e   :  { %v374_v42 = vsel %vm372_vm3, %v359_v21, %v367_v28  ;;  %v378_v43 = vsel %vm372_vm3, %v367_v28, %v359_v21 }
 0x23f   :  { %v361_v30 = vpop.permute.xlu0 %360  ;;  %v383_v48 = vmul.f32 %v1523_v38, %v378_v43  ;;  %v384_v49 = vmul.f32 %v1524_v39, %v374_v42  ;;  %v389_v61 = vadd.f32 %v381_v45, %v1855_v53  ;;  %v390_v62 = vadd.f32 %v382_v46, %v1857_v54 }
 0x241   :  { %v363_v31 = vpop.permute.xlu1 %362  ;;  %v391_v3 = vadd.f32 %v383_v48, %v1859_v55  ;;  %v392_v4 = vadd.f32 %v384_v49, %v1861_v56 }
 0x243   :  { %v369_v33 = vpop.permute.xlu0 %368 }
 0x244   :  { %v375_v63 = vsel %vm372_vm3, %v361_v30, %v369_v33  ;;  %v379_v0 = vsel %vm372_vm3, %v369_v33, %v361_v30 }
 0x245   :  { %v371_v44 = vpop.permute.xlu1 %370  ;;  %v385_v10 = vmul.f32 %v1523_v38, %v379_v0  ;;  %v386_v11 = vmul.f32 %v1524_v39, %v375_v63 }
 0x246   :  { %v376_v53 = vsel %vm372_vm3, %v363_v31, %v371_v44  ;;  %v380_v54 = vsel %vm372_vm3, %v371_v44, %v363_v31 }
 0x247   :  { %v387_v27 = vmul.f32 %v1523_v38, %v380_v54  ;;  %v388_v28 = vmul.f32 %v1524_v39, %v376_v53  ;;  %v393_v42 = vadd.f32 %v385_v10, %v1863_v57  ;;  %v394_v43 = vadd.f32 %v386_v11, %v1865_v58 }
 0x249   :  { %v396_v38 = vadd.f32 %v388_v28, %v1869_v60 }
 0x257   :  { %v398_v47 = vpop.permute.xlu0 %397 }
 0x259   :  { %v400_v50 = vpop.permute.xlu1 %399 }
 0x25b   :  { %v406_v1 = vpop.permute.xlu0 %405 }
 0x25c   :  { %v414_v5 = vsel %vm350_vm4, %v398_v47, %v406_v1  ;;  %v418_v6 = vsel %vm350_vm4, %v406_v1, %v398_v47  ;;  %v395_v47 = vadd.f32 %v387_v27, %v1867_v59 }
 0x25d   :  { %v422_v7 = vmul.f32 %v1525_v51, %v414_v5  ;;  %v423_v8 = vmul.f32 %v1526_v52, %v418_v6  ;;  %v408_v9 = vpop.permute.xlu1 %407 }
 0x25e   :  { %v415_v55 = vsel %vm350_vm4, %v400_v50, %v408_v9  ;;  %v419_v56 = vsel %vm350_vm4, %v408_v9, %v400_v50 }
 0x25f   :  { %v430_v12 = vadd.f32 %v422_v7, %v389_v61  ;;  %v431_v13 = vadd.f32 %v423_v8, %v390_v62  ;;  %v424_v18 = vmul.f32 %v1525_v51, %v415_v55  ;;  %v425_v21 = vmul.f32 %v1526_v52, %v419_v56  ;;  %v402_v26 = vpop.permute.xlu0 %401  ;;  %v1645_v56 = vld [vmem:[%s2382_s6] sm:$0xff]  }
 0x261   :  { %v432_v30 = vadd.f32 %v424_v18, %v391_v3  ;;  %v433_v31 = vadd.f32 %v425_v21, %v392_v4  ;;  %v404_v33 = vpop.permute.xlu1 %403  ;;  %v462_v40 = vadd.f32 %v1895_v14, %v430_v12  ;;  %v463_v41 = vadd.f32 %v1895_v14, %v431_v13  ;;  %v37_v21 = vld [vmem:[%s2377_s1] sm:$0x3] }
 0x263   :  { %v464_v44 = vadd.f32 %v1897_v15, %v432_v30  ;;  %v410_v45 = vpop.permute.xlu0 %409  ;;  %v465_v46 = vadd.f32 %v1897_v15, %v433_v31  ;;  %v470_v61 = vmax.f32 %v462_v40, 0.0  ;;  %v471_v15 = vmax.f32 %v463_v41, 0.0 }
 0x264   :  { %v416_v39 = vsel %vm350_vm4, %v402_v26, %v410_v45  ;;  %v420_v48 = vsel %vm350_vm4, %v410_v45, %v402_v26 }
 0x265   :  { %v472_v14 = vmax.f32 %v464_v44, 0.0  ;;  %v426_v49 = vmul.f32 %v1525_v51, %v416_v39  ;;  %v427_v57 = vmul.f32 %v1526_v52, %v420_v48  ;;  %v412_v50 = vpop.permute.xlu1 %411  ;;  %v473_v58 = vmax.f32 %v465_v46, 0.0 }
 0x266   :  { %v417_v62 = vsel %vm350_vm4, %v404_v33, %v412_v50  ;;  %v421_v59 = vsel %vm350_vm4, %v412_v50, %v404_v33 }
 0x267   :  { %v434_v60 = vadd.f32 %v426_v49, %v393_v42  ;;  %v435_v63 = vadd.f32 %v427_v57, %v394_v43  ;;  %v428_v0 = vmul.f32 %v1525_v51, %v417_v62  ;;  %v429_v1 = vmul.f32 %v1526_v52, %v421_v59 }
 0x268   :  { %v483_v3 = vpack.c.bf16 %v473_v58, %v471_v15  ;;  %v482_v4 = vpack.c.bf16 %v472_v14, %v470_v61 }
 0x269   :  { %v466_v5 = vadd.f32 %v1899_v16, %v434_v60  ;;  %v436_v6 = vadd.f32 %v428_v0, %v395_v47  ;;  %v437_v53 = vadd.f32 %v429_v1, %v396_v38  ;;  %v467_v54 = vadd.f32 %v1899_v16, %v435_v63  ;;  %v1646_v16 = vld [vmem:[%s2382_s6 + $0x8] sm:$0xff]  }
 0x26a   :  { %526 = vmatprep.subr.bf16.mxu0 %v483_v3 }
 0x26b   :  { %v468_v7 = vadd.f32 %v1901_v17, %v436_v6  ;;  %527 = vmatpush1.bf16.msra.mxu0 %v482_v4  ;;  %v469_v8 = vadd.f32 %v1901_v17, %v437_v53  ;;  %v474_v9 = vmax.f32 %v466_v5, 0.0  ;;  %v475_v11 = vmax.f32 %v467_v54, 0.0  ;;  %v1648_v6 = vld [vmem:[%s2380_s4 + $0x38] sm:$0xff]   ;;  %v1649_v53 = vld [vmem:[%s2380_s4 + $0x40] sm:$0xff]   ;;  %v1650_v54 = vld [vmem:[%s2380_s4 + $0x48] sm:$0xff]  }
 0x26c   :  { %v589_v17 = vshrl.u32 %v38_v19, 7 }
 0x26d   :  { %v476_v10 = vmax.f32 %v468_v7, 0.0  ;;  %v477_v55 = vmax.f32 %v469_v8, 0.0  ;;  %v1651_v7 = vld [vmem:[%s2380_s4 + $0x50] sm:$0xff]   ;;  %v1652_v8 = vld [vmem:[%s2380_s4 + $0x58] sm:$0xff]  }
 0x26e   :  { %v594_v12 = vsub.s32 1, %v589_v17  ;;  %v590_v26 = vsub.s32 0, %v589_v17 }
 0x26f   :  { %v485_v51 = vpack.c.bf16 %v477_v55, %v475_v11  ;;  %v484_v52 = vpack.c.bf16 %v476_v10, %v474_v9 }
 0x270   :  { %v1982_v42 = vrot.slane %v37_v21, %v594_v12  ;;  %v1985_v44 = vrot.slane %v37_v21, %v590_v26 }
 0x271   :  { %528 = vmatprep.subr.bf16.mxu0 %v485_v51 }
 0x272   :  { %529 = vmatpush1.bf16.msra.mxu0 %v484_v52 }
 0x274   :  { %v493_v13 = vpop.permute.xlu0 %492 }
 0x275   :  { %1529 = vmatmul.mubr.msk.bf16.vlgmr.msra.gmra.mrb[8].mxu0 %vm127_vm0, %v1645_v56 }
 0x276   :  { %568 = vmatprep.mubr.bf16.mxu0 %v1687_v2  ;;  %v498_v30 = vpop.permute.xlu1 %497 }
 0x278   :  { %v503_v39 = vpop.permute.xlu0 %502 }
 0x27a   :  { %v508_v50 = vpop.permute.xlu1 %507 }
 0x27d   :  { %1530 = vmatmul.mubr.msk.bf16.gmra.mrb[12].mxu0 %vm127_vm0, %v1646_v16 }
 0x27e   :  { %703 = vmatprep.mubr.bf16.mxu0 %v1687_v2 }
 0x348   :  { %v560_v18 = vpop.f32.mrb[8].mxu0 }
 0x349   :  { %v561_v27 = vadd.f32 %v560_v18, %v493_v13  ;;  %v562_v28 = vpop.f32.mrb[9].mxu0 }
 0x34a   :  { %v563_v31 = vadd.f32 %v562_v28, %v493_v13  ;;  %v564_v33 = vpop.f32.mrb[10].mxu0 }
 0x34b   :  { %v565_v40 = vadd.f32 %v564_v33, %v498_v30  ;;  %v566_v41 = vpop.f32.mrb[11].mxu0  ;;  %v579_v45 = vadd.f32 %v561_v27, %v1807_v25 }
 0x34c   :  { %v580_v43 = vadd.f32 %v563_v31, %v1803_v23  ;;  %v567_v19 = vadd.f32 %v566_v41, %v498_v30 }
 0x34d   :  { %v581_v46 = vadd.f32 %v565_v40, %v1801_v20  ;;  %v2000_v49 = vmul.f32 %v1985_v44, %v579_v45 }
 0x34e   :  { %v582_v47 = vadd.f32 %v567_v19, %v1805_v24  ;;  %v1994_v48 = vmul.f32 %v1982_v42, %v580_v43 }
 0x34f   :  { %v1991_v38 = vmul.f32 %v1985_v44, %v581_v46  ;;  %v1567_v46 = vld [vmem:[%s2383_s7 + $0x20] sm:$0xff] }
 0x350   :  { %v1997_v14 = vmul.f32 %v1982_v42, %v582_v47  ;;  %v570_v23 = vpop.f32.mrb[12].mxu0  ;;  %v1568_v47 = vld [vmem:[%s2383_s7 + $0x28] sm:$0xff] }
 0x351   :  { %v571_v57 = vadd.f32 %v570_v23, %v503_v39  ;;  %v572_v25 = vpop.f32.mrb[13].mxu0  ;;  %v619_v61 = vpack.c.bf16 %v1991_v38, %v2000_v49  ;;  %v1570_v23 = vld [vmem:[%s2383_s7 + $0x38] sm:$0xff] }
 0x352   :  { %v573_v20 = vadd.f32 %v572_v25, %v503_v39  ;;  %v574_v58 = vpop.f32.mrb[14].mxu0  ;;  %v620_v24 = vpack.c.bf16 %v1997_v14, %v1994_v48  ;;  %v1569_v39 = vld [vmem:[%s2383_s7 + $0x30] sm:$0xff]  ;;  %v1604_v25 = vld [vmem:[%s2381_s5 + $0x48] sm:$0xff] }
 0x353   :  { %v575_v62 = vadd.f32 %v574_v58, %v508_v50  ;;  %v576_v59 = vpop.f32.mrb[15].mxu0  ;;  %v583_v63 = vadd.f32 %v571_v57, %v1819_v36  ;;  %v1603_v57 = vld [vmem:[%s2381_s5 + $0x40] sm:$0xff]  ;;  %v866_v58 = vpop.permute.xlu0 %865 }
 0x354   :  { %v584_v15 = vadd.f32 %v573_v20, %v1815_v34  ;;  %v577_v60 = vadd.f32 %v576_v59, %v508_v50  ;;  %671 = vmatprep.subr.bf16.mxu0 %v620_v24  ;;  %v1605_v50 = vld [vmem:[%s2381_s5 + $0x50] sm:$0xff]  ;;  %v1606_v20 = vld [vmem:[%s2381_s5 + $0x58] sm:$0xff]  ;;  %v2096_v24 = vpop.permute.xlu1 %870 }
 0x355   :  { %v585_v0 = vadd.f32 %v575_v62, %v1813_v32  ;;  %672 = vmatpush1.bf16.msra.mxu0 %v619_v61  ;;  %v2020_v34 = vmul.f32 %v1985_v44, %v583_v63 }
 0x356   :  { %v586_v1 = vadd.f32 %v577_v60, %v1817_v35  ;;  %v2014_v4 = vmul.f32 %v1982_v42, %v584_v15  ;;  %v1647_v35 = vld [vmem:[%s2380_s4 + $0x30] sm:$0xff]  }
 0x357   :  { %v2011_v3 = vmul.f32 %v1985_v44, %v585_v0  ;;  %v2098_v61 = vpop.permute.xlu0 %875 }
 0x358   :  { %v2017_v5 = vmul.f32 %v1982_v42, %v586_v1  ;;  %v2100_v62 = vpop.permute.xlu1 %880 }
 0x359   :  { %v621_v32 = vpack.c.bf16 %v2011_v3, %v2020_v34 }
 0x35a   :  { %v622_v36 = vpack.c.bf16 %v2017_v5, %v2014_v4 }
 0x35c   :  { %673 = vmatprep.subr.bf16.mxu0 %v622_v36 }
 0x35d   :  { %674 = vmatpush1.bf16.msra.mxu0 %v621_v32  ;;  %v1555_v32 = vsel %vm764_vm6, 1.0, %v1690_v37 }
 0x360   :  { %1549 = vmatmul.mubr.msk.bf16.vlgmr.msra.gmra.mrb[16].mxu0 %vm127_vm0, %v1647_v35  ;;  %v1556_v35 = vsel %vm765_vm7, 1.0, %v1690_v37 }
 0x361   :  { %713 = vmatprep.mubr.bf16.mxu0 %v1687_v2 }
 0x368   :  { %1550 = vmatmul.mubr.msk.bf16.gmra.mrb[20].mxu0 %vm127_vm0, %v1648_v6 }
 0x369   :  { %723 = vmatprep.mubr.bf16.mxu0 %v1687_v2 }
 0x370   :  { %1551 = vmatmul.mubr.msk.bf16.gmra.mrb[24].mxu0 %vm127_vm0, %v1649_v53 }
 0x371   :  { %733 = vmatprep.mubr.bf16.mxu0 %v1687_v2 }
 0x378   :  { %1552 = vmatmul.mubr.msk.bf16.gmra.mrb[28].mxu0 %vm127_vm0, %v1650_v54 }
 0x379   :  { %743 = vmatprep.mubr.bf16.mxu0 %v1687_v2 }
 0x380   :  { %1553 = vmatmul.mubr.msk.bf16.gmra.mrb[32].mxu0 %vm127_vm0, %v1651_v7 }
 0x381   :  { %753 = vmatprep.mubr.bf16.mxu0 %v1687_v2 }
 0x388   :  { %1554 = vmatmul.mubr.msk.bf16.gmra.mrb[36].mxu0 %vm127_vm0, %v1652_v8 }
 0x389   :  { %1393 = vmatprep.mubr.bf16.mxu0 %v1687_v2 }
 0x433   :  { %v705_v9 = vpop.f32.mrb[16].mxu0 }
 0x434   :  { %776 = vrot.lane.b32.xlu0 %v705_v9, %s1691_s19  ;;  %v707_v10 = vpop.f32.mrb[17].mxu0 }
 0x435   :  { %v709_v11 = vpop.f32.mrb[18].mxu0 }
 0x436   :  { %778 = vrot.lane.b32.xlu1 %v709_v11, %s1691_s19  ;;  %v711_v55 = vpop.f32.mrb[19].mxu0 }
 0x438   :  { %784 = vrot.lane.b32.xlu0 %v707_v10, %s1691_s19 }
 0x43a   :  { %786 = vrot.lane.b32.xlu1 %v711_v55, %s1691_s19 }
 0x43b   :  { %v715_v51 = vpop.f32.mrb[20].mxu0 }
 0x43c   :  { %780 = vrot.lane.b32.xlu0 %v715_v51, %s1691_s19  ;;  %v717_v52 = vpop.f32.mrb[21].mxu0 }
 0x43d   :  { %v719_v56 = vpop.f32.mrb[22].mxu0 }
 0x43e   :  { %782 = vrot.lane.b32.xlu1 %v719_v56, %s1691_s19  ;;  %v721_v16 = vpop.f32.mrb[23].mxu0  ;;  %v1557_v56 = vsel %vm770_vm9, 1.0, %v1690_v37 }
 0x440   :  { %788 = vrot.lane.b32.xlu0 %v717_v52, %s1691_s19 }
 0x442   :  { %790 = vrot.lane.b32.xlu1 %v721_v16, %s1691_s19  ;;  %v1558_v16 = vsel %vm771_vm10, 1.0, %v1690_v37  ;;  %s1663_s19 = scalar_lea.vmem %s1496_s2, 256 }
 0x443   :  { %v2056_v17 = vpop.f32.mrb[24].mxu0  ;;  %p1664_p0 = scmp.ne.s32.totalorder %s1496_s2, %s1663_s19  ;;  %p1669_p2 = scmp.lt.s32.totalorder %s1663_s19, %s1663_s19 }
 0x444   :  { %v2058_v12 = vpop.f32.mrb[25].mxu0 }
 0x445   :  { %v2060_v13 = vpop.f32.mrb[26].mxu0  ;;  %p1670_p3 = por %p1669_p2, %p1668_p1 }
 0x446   :  { %v2062_v18 = vpop.f32.mrb[27].mxu0 }
 0x447   :  { %p1671_p4 = pnand %p1670_p3, %p1664_p0 }
 0x44b   :  { %v2064_v21 = vpop.f32.mrb[28].mxu0 }
 0x44c   :  { %v2066_v26 = vpop.f32.mrb[29].mxu0 }
 0x44d   :  { %v2068_v27 = vpop.f32.mrb[30].mxu0 }
 0x44e   :  { %v2070_v28 = vpop.f32.mrb[31].mxu0 }
 0x453   :  { %v745_v30 = vpop.f32.mrb[32].mxu0 }
 0x454   :  { %817 = vrot.lane.b32.xlu0 %v745_v30, %s1692_s20  ;;  %v747_v31 = vpop.f32.mrb[33].mxu0 }
 0x455   :  { %v749_v33 = vpop.f32.mrb[34].mxu0 }
 0x456   :  { %819 = vrot.lane.b32.xlu1 %v749_v33, %s1692_s20  ;;  %v751_v40 = vpop.f32.mrb[35].mxu0 }
 0x458   :  { %825 = vrot.lane.b32.xlu0 %v747_v31, %s1692_s20 }
 0x45a   :  { %827 = vrot.lane.b32.xlu1 %v751_v40, %s1692_s20 }
 0x45b   :  { %v755_v41 = vpop.f32.mrb[36].mxu0 }
 0x45c   :  { %821 = vrot.lane.b32.xlu0 %v755_v41, %s1692_s20  ;;  %v757_v43 = vpop.f32.mrb[37].mxu0 }
 0x45d   :  { %v759_v19 = vpop.f32.mrb[38].mxu0 }
 0x45e   :  { %823 = vrot.lane.b32.xlu1 %v759_v19, %s1692_s20  ;;  %v761_v45 = vpop.f32.mrb[39].mxu0 }
 0x460   :  { %829 = vrot.lane.b32.xlu0 %v757_v43, %s1692_s20 }
 0x462   :  { %831 = vrot.lane.b32.xlu1 %v761_v45, %s1692_s20 }
 0x464   :  { %915 = vperm.xlu0 %1629, %v1567_v46  }
 0x466   :  { %920 = vperm.xlu1 %1630, %v1568_v47  }
 0x468   :  { %925 = vperm.xlu0 %1629, %v1569_v39  }
 0x46a   :  { %930 = vperm.xlu1 %1630, %v1570_v23  }
 0x46c   :  { %1277 = vperm.xlu0 %1629, %v1603_v57  }
 0x46e   :  { %1282 = vperm.xlu1 %1630, %v1604_v25  }
 0x470   :  { %1287 = vperm.xlu0 %1629, %v1605_v50  }
 0x472   :  { %1292 = vperm.xlu1 %1630, %v1606_v20  }
 0x4a6   :  { %v777_v59 = vpop.permute.xlu0 %776 }
 0x4a8   :  { %v779_v15 = vpop.permute.xlu1 %778 }
 0x4aa   :  { %v785_v60 = vpop.permute.xlu0 %784 }
 0x4ab   :  { %v793_v6 = vsel %vm792_vm8, %v777_v59, %v785_v60  ;;  %v797_v53 = vsel %vm792_vm8, %v785_v60, %v777_v59 }
 0x4ac   :  { %v787_v63 = vpop.permute.xlu1 %786  ;;  %v801_v9 = vmul.f32 %v1555_v32, %v797_v53  ;;  %v802_v10 = vmul.f32 %v1556_v35, %v793_v6 }
 0x4ad   :  { %v794_v54 = vsel %vm792_vm8, %v779_v15, %v787_v63  ;;  %v798_v7 = vsel %vm792_vm8, %v787_v63, %v779_v15 }
 0x4ae   :  { %v781_v0 = vpop.permute.xlu0 %780  ;;  %v803_v55 = vmul.f32 %v1555_v32, %v798_v7  ;;  %v804_v51 = vmul.f32 %v1556_v35, %v794_v54  ;;  %v809_v30 = vadd.f32 %v801_v9, %v2056_v17  ;;  %v810_v31 = vadd.f32 %v802_v10, %v2058_v12 }
 0x4b0   :  { %v783_v1 = vpop.permute.xlu1 %782  ;;  %v811_v43 = vadd.f32 %v803_v55, %v2060_v13  ;;  %v812_v19 = vadd.f32 %v804_v51, %v2062_v18 }
 0x4b2   :  { %v789_v36 = vpop.permute.xlu0 %788 }
 0x4b3   :  { %v795_v33 = vsel %vm792_vm8, %v781_v0, %v789_v36  ;;  %v799_v40 = vsel %vm792_vm8, %v789_v36, %v781_v0 }
 0x4b4   :  { %v791_v8 = vpop.permute.xlu1 %790  ;;  %v805_v57 = vmul.f32 %v1555_v32, %v799_v40  ;;  %v806_v25 = vmul.f32 %v1556_v35, %v795_v33 }
 0x4b5   :  { %v796_v17 = vsel %vm792_vm8, %v783_v1, %v791_v8  ;;  %v800_v12 = vsel %vm792_vm8, %v791_v8, %v783_v1 }
 0x4b6   :  { %v807_v63 = vmul.f32 %v1555_v32, %v800_v12  ;;  %v808_v0 = vmul.f32 %v1556_v35, %v796_v17  ;;  %v813_v7 = vadd.f32 %v805_v57, %v2064_v21  ;;  %v814_v8 = vadd.f32 %v806_v25, %v2066_v26 }
 0x4b8   :  { %v815_v55 = vadd.f32 %v807_v63, %v2068_v27  ;;  %v816_v51 = vadd.f32 %v808_v0, %v2070_v28 }
 0x4c6   :  { %v818_v11 = vpop.permute.xlu0 %817 }
 0x4c8   :  { %v820_v52 = vpop.permute.xlu1 %819 }
 0x4ca   :  { %v826_v41 = vpop.permute.xlu0 %825 }
 0x4cb   :  { %v834_v45 = vsel %vm770_vm9, %v818_v11, %v826_v41  ;;  %v838_v46 = vsel %vm770_vm9, %v826_v41, %v818_v11 }
 0x4cc   :  { %v842_v47 = vmul.f32 %v1557_v56, %v834_v45  ;;  %v843_v39 = vmul.f32 %v1558_v16, %v838_v46  ;;  %v828_v23 = vpop.permute.xlu1 %827 }
 0x4cd   :  { %v835_v13 = vsel %vm770_vm9, %v820_v52, %v828_v23  ;;  %v839_v18 = vsel %vm770_vm9, %v828_v23, %v820_v52 }
 0x4ce   :  { %v850_v50 = vadd.f32 %v842_v47, %v809_v30  ;;  %v851_v20 = vadd.f32 %v843_v39, %v810_v31  ;;  %v844_v59 = vmul.f32 %v1557_v56, %v835_v13  ;;  %v845_v15 = vmul.f32 %v1558_v16, %v839_v18  ;;  %v822_v60 = vpop.permute.xlu0 %821 }
 0x4d0   :  { %v852_v36 = vadd.f32 %v844_v59, %v811_v43  ;;  %v853_v1 = vadd.f32 %v845_v15, %v812_v19  ;;  %v824_v6 = vpop.permute.xlu1 %823  ;;  %v883_v53 = vadd.f32 %v866_v58, %v850_v50  ;;  %v884_v54 = vadd.f32 %v866_v58, %v851_v20  ;;  %v1653_v50 = vld [vmem:[%s2382_s6 + $0x10] sm:$0xff]  }
 0x4d2   :  { %v885_v9 = vadd.f32 %v2096_v24, %v852_v36  ;;  %v830_v10 = vpop.permute.xlu0 %829  ;;  %v886_v11 = vadd.f32 %v2096_v24, %v853_v1  ;;  %v891_v31 = vmax.f32 %v883_v53, 0.0  ;;  %v892_v24 = vmax.f32 %v884_v54, 0.0 }
 0x4d3   :  { %v836_v32 = vsel %vm770_vm9, %v822_v60, %v830_v10  ;;  %v840_v35 = vsel %vm770_vm9, %v830_v10, %v822_v60 }
 0x4d4   :  { %v893_v58 = vmax.f32 %v885_v9, 0.0  ;;  %v846_v52 = vmul.f32 %v1557_v56, %v836_v32  ;;  %v847_v21 = vmul.f32 %v1558_v16, %v840_v35  ;;  %v832_v30 = vpop.permute.xlu1 %831  ;;  %v894_v26 = vmax.f32 %v886_v11, 0.0 }
 0x4d5   :  { %v837_v33 = vsel %vm770_vm9, %v824_v6, %v832_v30  ;;  %v841_v27 = vsel %vm770_vm9, %v832_v30, %v824_v6 }
 0x4d6   :  { %v854_v28 = vadd.f32 %v846_v52, %v813_v7  ;;  %v855_v40 = vadd.f32 %v847_v21, %v814_v8  ;;  %v848_v41 = vmul.f32 %v1557_v56, %v837_v33  ;;  %v849_v43 = vmul.f32 %v1558_v16, %v841_v27 }
 0x4d7   :  { %v905_v19 = vpack.c.bf16 %v894_v26, %v892_v24  ;;  %v904_v45 = vpack.c.bf16 %v893_v58, %v891_v31 }
 0x4d8   :  { %v887_v46 = vadd.f32 %v2098_v61, %v854_v28  ;;  %v856_v17 = vadd.f32 %v848_v41, %v815_v55  ;;  %v857_v12 = vadd.f32 %v849_v43, %v816_v51  ;;  %v888_v47 = vadd.f32 %v2098_v61, %v855_v40  ;;  %v1654_v61 = vld [vmem:[%s2382_s6 + $0x18] sm:$0xff]   ;;  %v1656_v43 = vld [vmem:[%s2380_s4 + $0x68] sm:$0xff]  }
 0x4d9   :  { %949 = vmatprep.subr.bf16.mxu1 %v905_v19  ;;  %v1657_v19 = vld [vmem:[%s2380_s4 + $0x70] sm:$0xff]  }
 0x4da   :  { %v889_v39 = vadd.f32 %v2100_v62, %v856_v17  ;;  %950 = vmatpush1.bf16.msra.mxu1 %v904_v45  ;;  %v890_v23 = vadd.f32 %v2100_v62, %v857_v12  ;;  %v895_v57 = vmax.f32 %v887_v46, 0.0  ;;  %v896_v13 = vmax.f32 %v888_v47, 0.0  ;;  %v1658_v45 = vld [vmem:[%s2380_s4 + $0x78] sm:$0xff]   ;;  %v1659_v46 = vld [vmem:[%s2380_s4 + $0x80] sm:$0xff]   ;;  %v1660_v17 = vld [vmem:[%s2380_s4 + $0x88] sm:$0xff]  }
 0x4dc   :  { %v897_v25 = vmax.f32 %v889_v39, 0.0  ;;  %v898_v18 = vmax.f32 %v890_v23, 0.0 }
 0x4de   :  { %v907_v56 = vpack.c.bf16 %v898_v18, %v896_v13  ;;  %v906_v16 = vpack.c.bf16 %v897_v25, %v895_v57 }
 0x4e0   :  { %951 = vmatprep.subr.bf16.mxu1 %v907_v56 }
 0x4e1   :  { %952 = vmatpush1.bf16.msra.mxu1 %v906_v16 }
 0x4e3   :  { %v916_v62 = vpop.permute.xlu0 %915 }
 0x4e4   :  { %1573 = vmatmul.mubr.msk.bf16.vlgmr.msra.gmra.mrb[24].mxu1 %vm127_vm0, %v1653_v50 }
 0x4e5   :  { %991 = vmatprep.mubr.bf16.mxu1 %v1687_v2  ;;  %v921_v60 = vpop.permute.xlu1 %920 }
 0x4e7   :  { %v926_v10 = vpop.permute.xlu0 %925 }
 0x4e9   :  { %v931_v35 = vpop.permute.xlu1 %930 }
 0x4ec   :  { %1574 = vmatmul.mubr.msk.bf16.gmra.mrb[28].mxu1 %vm127_vm0, %v1654_v61 }
 0x4ed   :  { %1115 = vmatprep.mubr.bf16.mxu1 %v1687_v2 }
 0x5b7   :  { %v983_v20 = vpop.f32.mrb[24].mxu1 }
 0x5b8   :  { %v984_v59 = vadd.f32 %v983_v20, %v916_v62  ;;  %v985_v15 = vpop.f32.mrb[25].mxu1 }
 0x5b9   :  { %v986_v63 = vadd.f32 %v985_v15, %v916_v62  ;;  %v987_v0 = vpop.f32.mrb[26].mxu1 }
 0x5ba   :  { %v988_v36 = vadd.f32 %v987_v0, %v921_v60  ;;  %v989_v1 = vpop.f32.mrb[27].mxu1  ;;  %v1002_v54 = vadd.f32 %v984_v59, %v2000_v49 }
 0x5bb   :  { %v1003_v6 = vadd.f32 %v986_v63, %v1994_v48  ;;  %v990_v53 = vadd.f32 %v989_v1, %v921_v60 }
 0x5bc   :  { %v1004_v7 = vadd.f32 %v988_v36, %v1991_v38  ;;  %v2183_v48 = vmul.f32 %v1002_v54, %v1985_v44 }
 0x5bd   :  { %v1005_v8 = vadd.f32 %v990_v53, %v1997_v14  ;;  %v2177_v11 = vmul.f32 %v1003_v6, %v1982_v42 }
 0x5be   :  { %v2174_v9 = vmul.f32 %v1004_v7, %v1985_v44  ;;  %v1611_v7 = vld [vmem:[%s2383_s7 + $0x40] sm:$0xff] }
 0x5bf   :  { %v2180_v55 = vmul.f32 %v1005_v8, %v1982_v42  ;;  %v993_v51 = vpop.f32.mrb[28].mxu1  ;;  %v1612_v8 = vld [vmem:[%s2383_s7 + $0x48] sm:$0xff] }
 0x5c0   :  { %v994_v32 = vadd.f32 %v993_v51, %v926_v10  ;;  %v995_v49 = vpop.f32.mrb[29].mxu1  ;;  %v1031_v52 = vpack.c.bf16 %v2174_v9, %v2183_v48  ;;  %v1614_v51 = vld [vmem:[%s2383_s7 + $0x58] sm:$0xff] }
 0x5c1   :  { %v996_v38 = vadd.f32 %v995_v49, %v926_v10  ;;  %v997_v58 = vpop.f32.mrb[30].mxu1  ;;  %v1032_v14 = vpack.c.bf16 %v2180_v55, %v2177_v11  ;;  %v1613_v10 = vld [vmem:[%s2383_s7 + $0x50] sm:$0xff]  ;;  %v1278_v49 = vpop.permute.xlu0 %1277 }
 0x5c2   :  { %v998_v21 = vadd.f32 %v997_v58, %v931_v35  ;;  %v999_v30 = vpop.f32.mrb[31].mxu1  ;;  %v1006_v33 = vadd.f32 %v994_v32, %v2020_v34  ;;  %v1435_v32 = vld [vmem:[%s2385_s9] sm:$0xff] }
 0x5c3   :  { %v1007_v26 = vadd.f32 %v996_v38, %v2014_v4  ;;  %v1000_v31 = vadd.f32 %v999_v30, %v931_v35  ;;  %1083 = vmatprep.subr.bf16.mxu1 %v1032_v14  ;;  %v2269_v35 = vpop.permute.xlu1 %1282 }
 0x5c4   :  { %v1008_v27 = vadd.f32 %v998_v21, %v2011_v3  ;;  %1084 = vmatpush1.bf16.msra.mxu1 %v1031_v52  ;;  %v2203_v4 = vmul.f32 %v1006_v33, %v1985_v44 }
 0x5c5   :  { %v1009_v24 = vadd.f32 %v1000_v31, %v2017_v5  ;;  %v2197_v40 = vmul.f32 %v1007_v26, %v1982_v42  ;;  %v1655_v5 = vld [vmem:[%s2380_s4 + $0x60] sm:$0xff]   ;;  %s1694_s4 = smov 124   ;;  %v2271_v38 = vpop.permute.xlu0 %1287 }
 0x5c6   :  { %v2194_v28 = vmul.f32 %v1008_v27, %v1985_v44  ;;  %v1599_v27 = vsel %vm1176_vm11, 1.0, %v1690_v37 }
 0x5c7   :  { %v2200_v41 = vmul.f32 %v1009_v24, %v1982_v42  ;;  %v2273_v58 = vpop.permute.xlu1 %1292  ;;  %v1600_v24 = vsel %vm1177_vm12, 1.0, %v1690_v37 }
 0x5c8   :  { %v1033_v3 = vpack.c.bf16 %v2194_v28, %v2203_v4 }
 0x5c9   :  { %v1034_v34 = vpack.c.bf16 %v2200_v41, %v2197_v40 }
 0x5cb   :  { %1085 = vmatprep.subr.bf16.mxu1 %v1034_v34 }
 0x5cc   :  { %1086 = vmatpush1.bf16.msra.mxu1 %v1033_v3 }
 0x5cf   :  { %1593 = vmatmul.mubr.msk.bf16.vlgmr.msra.gmra.mrb[32].mxu1 %vm127_vm0, %v1655_v5 }
 0x5d0   :  { %1125 = vmatprep.mubr.bf16.mxu1 %v1687_v2 }
 0x5d7   :  { %1594 = vmatmul.mubr.msk.bf16.gmra.mrb[36].mxu1 %vm127_vm0, %v1656_v43 }
 0x5d8   :  { %1135 = vmatprep.mubr.bf16.mxu1 %v1687_v2 }
 0x5df   :  { %1595 = vmatmul.mubr.msk.bf16.gmra.mrb[40].mxu1 %vm127_vm0, %v1657_v19 }
 0x5e0   :  { %1145 = vmatprep.mubr.bf16.mxu1 %v1687_v2 }
 0x5e7   :  { %1596 = vmatmul.mubr.msk.bf16.gmra.mrb[44].mxu1 %vm127_vm0, %v1658_v45 }
 0x5e8   :  { %1155 = vmatprep.mubr.bf16.mxu1 %v1687_v2 }
 0x5ef   :  { %1597 = vmatmul.mubr.msk.bf16.gmra.mrb[48].mxu1 %vm127_vm0, %v1659_v46 }
 0x5f0   :  { %1165 = vmatprep.mubr.bf16.mxu1 %v1687_v2 }
 0x5f7   :  { %1598 = vmatmul.mubr.msk.bf16.gmra.mrb[52].mxu1 %vm127_vm0, %v1660_v17 }
 0x6a2   :  { %v1117_v12 = vpop.f32.mrb[32].mxu1 }
 0x6a3   :  { %1188 = vrot.lane.b32.xlu0 %v1117_v12, %s1693_s28  ;;  %v1119_v47 = vpop.f32.mrb[33].mxu1 }
 0x6a4   :  { %v1121_v39 = vpop.f32.mrb[34].mxu1 }
 0x6a5   :  { %1190 = vrot.lane.b32.xlu1 %v1121_v39, %s1693_s28  ;;  %v1123_v23 = vpop.f32.mrb[35].mxu1 }
 0x6a7   :  { %1196 = vrot.lane.b32.xlu0 %v1119_v47, %s1693_s28 }
 0x6a9   :  { %1198 = vrot.lane.b32.xlu1 %v1123_v23, %s1693_s28  ;;  %v1601_v23 = vsel %vm1182_vm14, 1.0, %v1690_v37 }
 0x6aa   :  { %v1127_v57 = vpop.f32.mrb[36].mxu1 }
 0x6ab   :  { %1192 = vrot.lane.b32.xlu0 %v1127_v57, %s1693_s28  ;;  %v1129_v25 = vpop.f32.mrb[37].mxu1  ;;  %v1602_v57 = vsel %vm1183_vm15, 1.0, %v1690_v37 }
 0x6ac   :  { %v1131_v13 = vpop.f32.mrb[38].mxu1 }
 0x6ad   :  { %1194 = vrot.lane.b32.xlu1 %v1131_v13, %s1693_s28  ;;  %v1133_v18 = vpop.f32.mrb[39].mxu1 }
 0x6af   :  { %1200 = vrot.lane.b32.xlu0 %v1129_v25, %s1693_s28 }
 0x6b1   :  { %1202 = vrot.lane.b32.xlu1 %v1133_v18, %s1693_s28 }
 0x6b2   :  { %v2238_v56 = vpop.f32.mrb[40].mxu1 }
 0x6b3   :  { %v2240_v16 = vpop.f32.mrb[41].mxu1 }
 0x6b4   :  { %v2242_v50 = vpop.f32.mrb[42].mxu1 }
 0x6b5   :  { %v2244_v61 = vpop.f32.mrb[43].mxu1 }
 0x6ba   :  { %v2246_v62 = vpop.f32.mrb[44].mxu1 }
 0x6bb   :  { %v2248_v20 = vpop.f32.mrb[45].mxu1 }
 0x6bc   :  { %v2250_v59 = vpop.f32.mrb[46].mxu1 }
 0x6bd   :  { %v2252_v15 = vpop.f32.mrb[47].mxu1 }
 0x6c2   :  { %v1157_v60 = vpop.f32.mrb[48].mxu1 }
 0x6c3   :  { %1229 = vrot.lane.b32.xlu0 %v1157_v60, %s1694_s4  ;;  %v1159_v63 = vpop.f32.mrb[49].mxu1 }
 0x6c4   :  { %v1161_v0 = vpop.f32.mrb[50].mxu1 }
 0x6c5   :  { %1231 = vrot.lane.b32.xlu1 %v1161_v0, %s1694_s4  ;;  %v1163_v36 = vpop.f32.mrb[51].mxu1 }
 0x6c7   :  { %1237 = vrot.lane.b32.xlu0 %v1159_v63, %s1694_s4 }
 0x6c9   :  { %1239 = vrot.lane.b32.xlu1 %v1163_v36, %s1694_s4 }
 0x6ca   :  { %v1167_v1 = vpop.f32.mrb[52].mxu1 }
 0x6cb   :  { %1233 = vrot.lane.b32.xlu0 %v1167_v1, %s1694_s4  ;;  %v1169_v6 = vpop.f32.mrb[53].mxu1 }
 0x6cc   :  { %v1171_v53 = vpop.f32.mrb[54].mxu1 }
 0x6cd   :  { %1235 = vrot.lane.b32.xlu1 %v1171_v53, %s1694_s4  ;;  %v1173_v54 = vpop.f32.mrb[55].mxu1 }
 0x6cf   :  { %1241 = vrot.lane.b32.xlu0 %v1169_v6, %s1694_s4 }
 0x6d1   :  { %1243 = vrot.lane.b32.xlu1 %v1173_v54, %s1694_s4 }
 0x6d3   :  { %1327 = vperm.xlu0 %1629, %v1611_v7  }
 0x6d5   :  { %1332 = vperm.xlu1 %1630, %v1612_v8  }
 0x6d7   :  { %1337 = vperm.xlu0 %1629, %v1613_v10  }
 0x6d9   :  { %1342 = vperm.xlu1 %1630, %v1614_v51  }
 0x6db   :  { %1438 = vperm.xlu0 %1629, %v1435_v32  }
 0x715   :  { %v1189_v14 = vpop.permute.xlu0 %1188 }
 0x717   :  { %v1191_v52 = vpop.permute.xlu1 %1190 }
 0x719   :  { %v1197_v21 = vpop.permute.xlu0 %1196 }
 0x71a   :  { %v1205_v34 = vsel %vm1204_vm13, %v1189_v14, %v1197_v21  ;;  %v1209_v3 = vsel %vm1204_vm13, %v1197_v21, %v1189_v14 }
 0x71b   :  { %v1199_v30 = vpop.permute.xlu1 %1198  ;;  %v1213_v45 = vmul.f32 %v1599_v27, %v1209_v3  ;;  %v1214_v46 = vmul.f32 %v1600_v24, %v1205_v34 }
 0x71c   :  { %v1206_v5 = vsel %vm1204_vm13, %v1191_v52, %v1199_v30  ;;  %v1210_v43 = vsel %vm1204_vm13, %v1199_v30, %v1191_v52 }
 0x71d   :  { %v1193_v26 = vpop.permute.xlu0 %1192  ;;  %v1215_v12 = vmul.f32 %v1599_v27, %v1210_v43  ;;  %v1216_v47 = vmul.f32 %v1600_v24, %v1206_v5  ;;  %v1221_v25 = vadd.f32 %v1213_v45, %v2238_v56  ;;  %v1222_v13 = vadd.f32 %v1214_v46, %v2240_v16 }
 0x71f   :  { %v1195_v31 = vpop.permute.xlu1 %1194  ;;  %v1223_v63 = vadd.f32 %v1215_v12, %v2242_v50  ;;  %v1224_v0 = vadd.f32 %v1216_v47, %v2244_v61 }
 0x721   :  { %v1201_v33 = vpop.permute.xlu0 %1200 }
 0x722   :  { %v1207_v18 = vsel %vm1204_vm13, %v1193_v26, %v1201_v33  ;;  %v1211_v60 = vsel %vm1204_vm13, %v1201_v33, %v1193_v26 }
 0x723   :  { %v1203_v19 = vpop.permute.xlu1 %1202  ;;  %v1217_v54 = vmul.f32 %v1599_v27, %v1211_v60  ;;  %v1218_v7 = vmul.f32 %v1600_v24, %v1207_v18 }
 0x724   :  { %v1208_v56 = vsel %vm1204_vm13, %v1195_v31, %v1203_v19  ;;  %v1212_v16 = vsel %vm1204_vm13, %v1203_v19, %v1195_v31 }
 0x725   :  { %v1219_v52 = vmul.f32 %v1599_v27, %v1212_v16  ;;  %v1220_v21 = vmul.f32 %v1600_v24, %v1208_v56  ;;  %v1225_v3 = vadd.f32 %v1217_v54, %v2246_v62  ;;  %v1226_v5 = vadd.f32 %v1218_v7, %v2248_v20  ;;  %v1661_v7 = vld [vmem:[%s2382_s6 + $0x20] sm:$0xff]  }
 0x727   :  { %v1227_v46 = vadd.f32 %v1219_v52, %v2250_v59 }
 0x735   :  { %v1230_v17 = vpop.permute.xlu0 %1229 }
 0x737   :  { %v1232_v39 = vpop.permute.xlu1 %1231 }
 0x739   :  { %v1238_v29 = vpop.permute.xlu0 %1237 }
 0x73a   :  { %v1246_v36 = vsel %vm1182_vm14, %v1230_v17, %v1238_v29  ;;  %v1250_v37 = vsel %vm1182_vm14, %v1238_v29, %v1230_v17  ;;  %v1228_v17 = vadd.f32 %v1220_v21, %v2252_v15 }
 0x73b   :  { %v1254_v1 = vmul.f32 %v1601_v23, %v1246_v36  ;;  %v1255_v6 = vmul.f32 %v1602_v57, %v1250_v37  ;;  %v1240_v53 = vpop.permute.xlu1 %1239 }
 0x73c   :  { %v1247_v50 = vsel %vm1182_vm14, %v1232_v39, %v1240_v53  ;;  %v1251_v61 = vsel %vm1182_vm14, %v1240_v53, %v1232_v39 }
 0x73d   :  { %v1262_v8 = vadd.f32 %v1254_v1, %v1221_v25  ;;  %v1263_v10 = vadd.f32 %v1255_v6, %v1222_v13  ;;  %v1256_v51 = vmul.f32 %v1601_v23, %v1247_v50  ;;  %v1257_v32 = vmul.f32 %v1602_v57, %v1251_v61  ;;  %v1234_v14 = vpop.permute.xlu0 %1233 }
 0x73f   :  { %v1264_v30 = vadd.f32 %v1256_v51, %v1223_v63  ;;  %v1265_v26 = vadd.f32 %v1257_v32, %v1224_v0  ;;  %v1236_v31 = vpop.permute.xlu1 %1235  ;;  %v1295_v33 = vadd.f32 %v1278_v49, %v1262_v8  ;;  %v1296_v34 = vadd.f32 %v1278_v49, %v1263_v10 }
 0x741   :  { %v1297_v43 = vadd.f32 %v2269_v35, %v1264_v30  ;;  %v1242_v19 = vpop.permute.xlu0 %1241  ;;  %v1298_v45 = vadd.f32 %v2269_v35, %v1265_v26  ;;  %v1303_v39 = vmax.f32 %v1295_v33, 0.0  ;;  %v1304_v35 = vmax.f32 %v1296_v34, 0.0 }
 0x742   :  { %v1248_v27 = vsel %vm1182_vm14, %v1234_v14, %v1242_v19  ;;  %v1252_v24 = vsel %vm1182_vm14, %v1242_v19, %v1234_v14 }
 0x743   :  { %v1305_v49 = vmax.f32 %v1297_v43, 0.0  ;;  %v1258_v12 = vmul.f32 %v1601_v23, %v1248_v27  ;;  %v1259_v62 = vmul.f32 %v1602_v57, %v1252_v24  ;;  %v1244_v47 = vpop.permute.xlu1 %1243  ;;  %v1306_v20 = vmax.f32 %v1298_v45, 0.0 }
 0x744   :  { %v1249_v25 = vsel %vm1182_vm14, %v1236_v31, %v1244_v47  ;;  %v1253_v59 = vsel %vm1182_vm14, %v1244_v47, %v1236_v31 }
 0x745   :  { %v1266_v15 = vadd.f32 %v1258_v12, %v1225_v3  ;;  %v1267_v13 = vadd.f32 %v1259_v62, %v1226_v5  ;;  %v1260_v18 = vmul.f32 %v1601_v23, %v1249_v25  ;;  %v1261_v60 = vmul.f32 %v1602_v57, %v1253_v59 }
 0x746   :  { %v1317_v29 = vpack.c.bf16 %v1306_v20, %v1304_v35  ;;  %v1316_v63 = vpack.c.bf16 %v1305_v49, %v1303_v39 }
 0x747   :  { %v1299_v0 = vadd.f32 %v2271_v38, %v1266_v15  ;;  %v1268_v36 = vadd.f32 %v1260_v18, %v1227_v46  ;;  %v1269_v37 = vadd.f32 %v1261_v60, %v1228_v17  ;;  %v1300_v56 = vadd.f32 %v2271_v38, %v1267_v13  ;;  %v1662_v38 = vld [vmem:[%s2382_s6 + $0x28] sm:$0xff]  }
 0x748   :  { %1361 = vmatprep.subr.bf16.mxu0 %v1317_v29 }
 0x749   :  { %v1301_v16 = vadd.f32 %v2273_v58, %v1268_v36  ;;  %1362 = vmatpush1.bf16.msra.mxu0 %v1316_v63  ;;  %v1302_v22 = vadd.f32 %v2273_v58, %v1269_v37  ;;  %v1307_v1 = vmax.f32 %v1299_v0, 0.0  ;;  %v1308_v53 = vmax.f32 %v1300_v56, 0.0 }
 0x74b   :  { %v1309_v6 = vmax.f32 %v1301_v16, 0.0  ;;  %v1310_v54 = vmax.f32 %v1302_v22, 0.0 }
 0x74d   :  { %v1319_v23 = vpack.c.bf16 %v1310_v54, %v1308_v53  ;;  %v1318_v57 = vpack.c.bf16 %v1309_v6, %v1307_v1 }
 0x74f   :  { %1363 = vmatprep.subr.bf16.mxu0 %v1319_v23 }
 0x750   :  { %1364 = vmatpush1.bf16.msra.mxu0 %v1318_v57 }
 0x752   :  { %v1328_v58 = vpop.permute.xlu0 %1327 }
 0x753   :  { %1617 = vmatmul.mubr.msk.bf16.vlgmr.msra.gmra.mrb[40].mxu0 %vm127_vm0, %v1661_v7 }
 0x754   :  { %1403 = vmatprep.mubr.bf16.mxu0 %v1687_v2  ;;  %v1333_v10 = vpop.permute.xlu1 %1332 }
 0x756   :  { %v1338_v3 = vpop.permute.xlu0 %1337 }
 0x758   :  { %v1343_v17 = vpop.permute.xlu1 %1342 }
 0x75b   :  { %1618 = vmatmul.mubr.msk.bf16.gmra.mrb[44].mxu0 %vm127_vm0, %v1662_v38 }
 0x75c   :  { %1476 = vmatprep.mubr.bf16.mxu0 %v1687_v2 }
 0x826   :  { %v1395_v50 = vpop.f32.mrb[40].mxu0 }
 0x827   :  { %v1396_v61 = vadd.f32 %v1395_v50, %v1328_v58  ;;  %v1397_v8 = vpop.f32.mrb[41].mxu0 }
 0x828   :  { %v1398_v51 = vadd.f32 %v1397_v8, %v1328_v58  ;;  %v1399_v32 = vpop.f32.mrb[42].mxu0 }
 0x829   :  { %v1414_v14 = vadd.f32 %v1396_v61, %v2183_v48  ;;  %v1400_v52 = vadd.f32 %v1399_v32, %v1333_v10  ;;  %v1401_v21 = vpop.f32.mrb[43].mxu0 }
 0x82a   :  { %v1415_v30 = vadd.f32 %v1398_v51, %v2177_v11  ;;  %v1402_v26 = vadd.f32 %v1401_v21, %v1333_v10 }
 0x82b   :  { %v1416_v31 = vadd.f32 %v1400_v52, %v2174_v9  ;;  %v1422_v2 = vmul.f32 %v1414_v14, %v1985_v44 }
 0x82c   :  { %v1417_v33 = vadd.f32 %v1402_v26, %v2180_v55  ;;  %v1423_v5 = vmul.f32 %v1415_v30, %v1982_v42 }
 0x82d   :  { %v1424_v34 = vmul.f32 %v1416_v31, %v1985_v44 }
 0x82e   :  { %v1425_v43 = vmul.f32 %v1417_v33, %v1982_v42  ;;  %v1405_v19 = vpop.f32.mrb[44].mxu0 }
 0x82f   :  { %v1431_v48 = vpack.c.bf16 %v1424_v34, %v1422_v2  ;;  %v1406_v45 = vadd.f32 %v1405_v19, %v1338_v3  ;;  %v1407_v46 = vpop.f32.mrb[45].mxu0 }
 0x830   :  { %v1408_v11 = vadd.f32 %v1407_v46, %v1338_v3  ;;  %v1409_v27 = vpop.f32.mrb[46].mxu0  ;;  %v1432_v24 = vpack.c.bf16 %v1425_v43, %v1423_v5 }
 0x831   :  { %v1418_v9 = vadd.f32 %v1406_v45, %v2203_v4  ;;  %v1410_v55 = vadd.f32 %v1409_v27, %v1343_v17  ;;  %v1411_v49 = vpop.f32.mrb[47].mxu0 }
 0x832   :  { %v1419_v12 = vadd.f32 %v1408_v11, %v2197_v40  ;;  %v1412_v62 = vadd.f32 %v1411_v49, %v1343_v17  ;;  %1444 = vmatprep.subr.bf16.mxu0 %v1432_v24  ;;  %v1430_v40 = vld [vmem:[%s2384_s8] sm:$0xf] }
 0x833   :  { %v1420_v47 = vadd.f32 %v1410_v55, %v2194_v28  ;;  %1445 = vmatpush1.bf16.msra.mxu0 %v1431_v48  ;;  %v1426_v39 = vmul.f32 %v1418_v9, %v1985_v44  ;;  %v1439_v28 = vpop.permute.xlu0 %1438 }
 0x834   :  { %v1421_v20 = vadd.f32 %v1412_v62, %v2200_v41  ;;  %v1427_v59 = vmul.f32 %v1419_v12, %v1982_v42 }
 0x835   :  { %v1428_v25 = vmul.f32 %v1420_v47, %v1985_v44 }
 0x836   :  { %v1429_v35 = vmul.f32 %v1421_v20, %v1982_v42 }
 0x837   :  { %v1433_v4 = vpack.c.bf16 %v1428_v25, %v1426_v39 }
 0x838   :  { %v1434_v15 = vpack.c.bf16 %v1429_v35, %v1427_v59 }
 0x83a   :  { %1446 = vmatprep.subr.bf16.mxu0 %v1434_v15 }
 0x83b   :  { %1447 = vmatpush1.bf16.msra.mxu0 %v1433_v4 }
 0x83e   :  { %1619 = vmatmul.mubr.msk.bf16.vlgmr.msra.gmra.mrb[48].mxu0 %vm127_vm0, %v1430_v40 }
 0x911   :  { %v1478_v41 = vpop.f32.mrb[48].mxu0 }
 0x912   :  { %v1479_v13 = vadd.f32 %v1478_v41, %v1439_v28  ;;  %v1480_v18 = vpop.f32.mrb[49].mxu0 }
 0x913   :  { %v1481_v60 = vadd.f32 %v1480_v18, %v1439_v28  ;;  %v1482_v29 = vpop.f32.mrb[50].mxu0 }
 0x914   :  { %v1485_v63 = vmul.f32 %v1479_v13, %v1985_v44  ;;  %v1483_v0 = vpop.f32.mrb[51].mxu0 }
 0x915   :  { %v1486_v36 = vmul.f32 %v1481_v60, %v1982_v42 }
 0x916   :  { %1487 = vst [vmem:[#allocation2] sm:$0xff] %v1485_v63 }
 0x917   :  { %1488 = vst [vmem:[#allocation2 + $0x8] sm:$0xff] %v1486_v36 }
 0x918   :  { %1674 = shalt.err (!%p1671_p4)
}
 0x919   :  { %s1675_s21 = scalar_lea.hbm %s2386_s10, 256 }
 0x91a   :  { %p1676_p5 = scmp.ne.s32.totalorder %s2386_s10, %s1675_s21  ;;  %p1679_p6 = scmp.lt.u32.totalorder %s1675_s21, %s2386_s10 }
 0x91c   :  { %p1681_p7 = pnand %p1679_p6, %p1676_p5 }
 0x91e   :  { %1684 = shalt.err (!%p1681_p7)
}
 0x91f   :  { %1498 = dma.vmem_to_hbm [thread:$0]  %s1496_s2, 256, %s2386_s10, [#allocation3]  }
 0x920   :  { %1685 = dma.done.wait [#allocation3], 256  }
 0x921   :  { %1686 = vsyncadd [#allocation3], 4294967040 }
 0x922   :  { %1502 = vsyncpa [#allocation3], 1 }

</bundles_post_ra>
